<compile_context>
chip_gen: v5e
topology: v5e:2x2
jax: 0.10.0
libtpu: 0.0.40
codegen_flags: <defaults>
</compile_context>

<pallas_src>
import jax
import jax.numpy as jnp
from jax import lax
from jax.experimental import pallas as pl
from jax.experimental.pallas import tpu as pltpu

COUT = 32      # channels of every conv layer
LANES = 128    # lane-dense output width (>= COUT)
EPS = 1e-5     # BatchNorm eps (PyTorch default)


def _round_up(x, m):
    return (x + m - 1) // m * m


def _default_tile_m():
    # MXU height: 128 rows on v5e (4x128x128), 256 on v6e / v7x (2x256x256).
    try:
        kind = jax.devices()[0].device_kind.lower()
        if "v5e" in kind or "v5 lite" in kind or "v5litepod" in kind:
            return 128
    except Exception:
        pass
    return 256


def _conv_bn_relu_kernel(p_ref, w_ref, scale_ref, bias_ref, o_ref):
    # p_ref: (TM, K) bf16 patches       w_ref: (K, LANES) bf16
    # scale/bias: (1, LANES) f32 folded BatchNorm    o_ref: (TM, LANES) f32
    acc = jnp.dot(p_ref[...], w_ref[...], preferred_element_type=jnp.float32)
    y = acc * scale_ref[...] + bias_ref[...]
    o_ref[...] = jnp.maximum(y, 0.0).astype(o_ref.dtype)


def _im2col(x, k=3, s=2):
    """x: (B, H, W, C) NHWC -> patches (B*OH*OW, k*k*C), plus (B, OH, OW)."""
    B, H, W, C = x.shape
    OH = (H - k) // s + 1
    OW = (W - k) // s + 1
    cols = []
    for kh in range(k):
        for kw in range(k):
            cols.append(x[:, kh:kh + s * (OH - 1) + 1:s, kw:kw + s * (OW - 1) + 1:s, :])
    patches = jnp.concatenate(cols, axis=-1).reshape(B * OH * OW, k * k * C)
    return patches, (B, OH, OW)


def conv_bn_relu_layer(x, w_flat, scale, bias, *, tile_m):
    """One Conv(3x3, stride 2, no bias) + folded BatchNorm + ReLU layer.

    x:      (B, H, W, Cin) f32 NHWC
    w_flat: (9*Cin, LANES) bf16 (zero-padded beyond COUT)
    scale:  (1, LANES) f32      bias: (1, LANES) f32
    returns (B, OH, OW, COUT) f32
    """
    patches, (B, OH, OW) = _im2col(x)
    M, K = patches.shape

    tm = min(tile_m, _round_up(M, 16))
    m_pad = _round_up(M, tm)
    if m_pad != M:
        patches = jnp.pad(patches, ((0, m_pad - M), (0, 0)))
    patches = patches.astype(jnp.bfloat16)

    cost = pl.CostEstimate(
        flops=2 * m_pad * K * LANES,
        transcendentals=0,
        bytes_accessed=(patches.size + w_flat.size) * 2
        + (scale.size + bias.size + m_pad * LANES) * 4,
    )

    out = pl.pallas_call(
        _conv_bn_relu_kernel,
        out_shape=jax.ShapeDtypeStruct((m_pad, LANES), jnp.float32),
        grid=(m_pad // tm,),
        in_specs=[
            pl.BlockSpec((tm, K), lambda i: (i, 0)),       # streamed patch tiles
            pl.BlockSpec((K, LANES), lambda i: (0, 0)),    # weights resident in VMEM
            pl.BlockSpec((1, LANES), lambda i: (0, 0)),    # BN scale resident
            pl.BlockSpec((1, LANES), lambda i: (0, 0)),    # BN bias resident
        ],
        out_specs=pl.BlockSpec((tm, LANES), lambda i: (i, 0)),  # lane-dense 128-wide store
        compiler_params=pltpu.CompilerParams(
            dimension_semantics=("parallel",)),
        cost_estimate=cost,
    )(patches, w_flat, scale, bias)

    return out[:M, :COUT].reshape(B, OH, OW, COUT)


def conv_module_forward(x_nchw, params, *, tile_m=None):
    """Pallas forward of ConvModule. x_nchw: (B, 21, H, W) f32 -> (B, 32*2*4) f32."""
    if tile_m is None:
        tile_m = _default_tile_m()
    y = jnp.transpose(x_nchw, (0, 2, 3, 1))        # NCHW -> NHWC (layout plumbing)
    for (w_flat, scale, bias) in params:
        y = conv_bn_relu_layer(y, w_flat, scale, bias, tile_m=tile_m)
    # match torch's x.view(-1, 32*2*4): flatten in NCHW (C, H, W) order
    B = y.shape[0]
    return jnp.transpose(y, (0, 3, 1, 2)).reshape(B, -1)


def init_params(key, cins=(21, 32, 32, 32)):
    """Returns (raw_params for pure-JAX reference, packed_params for the Pallas kernels)."""
    raw, packed = [], []
    for cin in cins:
        key, kw, kg, kb, km, kv = jax.random.split(key, 6)
        fan_in = cin * 9
        bound = 1.0 / float(fan_in) ** 0.5
        w_hwio = jax.random.uniform(kw, (3, 3, cin, COUT), jnp.float32, -bound, bound)
        gamma = jax.random.uniform(kg, (COUT,), jnp.float32, 0.5, 1.5)
        beta = jax.random.uniform(kb, (COUT,), jnp.float32, -0.2, 0.2)
        mean = jax.random.uniform(km, (COUT,), jnp.float32, -0.2, 0.2)
        var = jax.random.uniform(kv, (COUT,), jnp.float32, 0.5, 1.5)
        raw.append((w_hwio, gamma, beta, mean, var))

        scale = gamma / jnp.sqrt(var + EPS)            # fold BN (inference) into scale/bias
        bias = beta - mean * scale
        w_flat = w_hwio.reshape(9 * cin, COUT)
        w_flat = jnp.pad(w_flat, ((0, 0), (0, LANES - COUT))).astype(jnp.bfloat16)
        scale_p = jnp.pad(scale, (0, LANES - COUT)).reshape(1, LANES)
        bias_p = jnp.pad(bias, (0, LANES - COUT)).reshape(1, LANES)
        packed.append((w_flat, scale_p, bias_p))
    return raw, packed


def reference_forward(x_nchw, raw_params):
    """Pure-JAX reference matching the PyTorch ConvModule (eval-mode BatchNorm)."""
    y = jnp.transpose(x_nchw, (0, 2, 3, 1))
    for (w_hwio, gamma, beta, mean, var) in raw_params:
        y = lax.conv_general_dilated(
            y, w_hwio, window_strides=(2, 2), padding="VALID",
            dimension_numbers=("NHWC", "HWIO", "NHWC"),
            precision=lax.Precision.HIGHEST)
        y = (y - mean) / jnp.sqrt(var + EPS) * gamma + beta
        y = jnp.maximum(y, 0.0)
    B = y.shape[0]
    return jnp.transpose(y, (0, 3, 1, 2)).reshape(B, -1)


if __name__ == "__main__":
    key = jax.random.PRNGKey(0)
    kx, kp = jax.random.split(key)

    # (B, 21, 48, 80) --4x stride-2 valid 3x3 conv--> (B, 32, 2, 4) --view--> (B, 256)
    B = 2
    x = jax.random.normal(kx, (B, 21, 48, 80), dtype=jnp.float32)
    raw_params, packed_params = init_params(kp)

    fwd = jax.jit(lambda xx: conv_module_forward(xx, packed_params))
    out = jax.block_until_ready(fwd(x))
    assert out.shape == (B, 32 * 2 * 4)

    ref = reference_forward(x, raw_params)
    max_err = float(jnp.max(jnp.abs(out - ref)))
    assert jnp.allclose(out, ref, atol=5e-2, rtol=5e-2), max_err

    print("KERNEL_OK")
</pallas_src>

<mosaic_0001>
module attributes {stable_mosaic.version = 11 : i64} {
  func.func @_conv_bn_relu_kernel(%arg0: i32, %arg1: memref<256x189xbf16, #tpu.memory_space<vmem>>, %arg2: memref<189x128xbf16, #tpu.memory_space<vmem>>, %arg3: memref<1x128xf32, #tpu.memory_space<vmem>>, %arg4: memref<1x128xf32, #tpu.memory_space<vmem>>, %arg5: memref<256x128xf32, #tpu.memory_space<vmem>>) attributes {dimension_semantics = [#tpu.dimension_semantics<parallel>], iteration_bounds = array<i64: 8>, scalar_prefetch = 0 : i64, scratch_operands = 0 : i64, tpu.core_type = #tpu.core_type<tc>, window_params = [{transform_indices = @transform_0, window_bounds = array<i64: 256, 189>}, {pipeline_mode = #tpu.pipeline_mode<synchronous>, transform_indices = @transform_1, window_bounds = array<i64: 189, 128>}, {pipeline_mode = #tpu.pipeline_mode<synchronous>, transform_indices = @transform_2, window_bounds = array<i64: 1, 128>}, {pipeline_mode = #tpu.pipeline_mode<synchronous>, transform_indices = @transform_3, window_bounds = array<i64: 1, 128>}, {transform_indices = @transform_4, window_bounds = array<i64: 256, 128>}]} {
    %c0 = arith.constant 0 : index
    %c0_0 = arith.constant 0 : index
    %0 = vector.load %arg1[%c0, %c0_0] : memref<256x189xbf16, #tpu.memory_space<vmem>>, vector<256x189xbf16>
    %c0_1 = arith.constant 0 : index
    %c0_2 = arith.constant 0 : index
    %1 = vector.load %arg2[%c0_1, %c0_2] : memref<189x128xbf16, #tpu.memory_space<vmem>>, vector<189x128xbf16>
    %cst = arith.constant dense<0.000000e+00> : vector<256x128xf32>
    %2 = tpu.matmul %0, %1, %cst {dimension_numbers = #tpu.dot_dimension_numbers<[1], [0], [0], [1], [0, 0, 1, 1], [], []>} : vector<256x189xbf16>, vector<189x128xbf16>, vector<256x128xf32> -> vector<256x128xf32>
    %c0_3 = arith.constant 0 : index
    %c0_4 = arith.constant 0 : index
    %3 = vector.load %arg3[%c0_3, %c0_4] : memref<1x128xf32, #tpu.memory_space<vmem>>, vector<1x128xf32>
    %4 = vector.broadcast %3 : vector<1x128xf32> to vector<256x128xf32>
    %5 = arith.mulf %2, %4 : vector<256x128xf32>
    %c0_5 = arith.constant 0 : index
    %c0_6 = arith.constant 0 : index
    %6 = vector.load %arg4[%c0_5, %c0_6] : memref<1x128xf32, #tpu.memory_space<vmem>>, vector<1x128xf32>
    %7 = vector.broadcast %6 : vector<1x128xf32> to vector<256x128xf32>
    %8 = arith.addf %5, %7 : vector<256x128xf32>
    %cst_7 = arith.constant 0.000000e+00 : f32
    %9 = vector.broadcast %cst_7 : f32 to vector<256x128xf32>
    %10 = arith.maximumf %8, %9 : vector<256x128xf32>
    %c0_8 = arith.constant 0 : index
    %c0_9 = arith.constant 0 : index
    %11 = vector.load %arg5[%c0_8, %c0_9] : memref<256x128xf32, #tpu.memory_space<vmem>>, vector<256x128xf32>
    tpu.vector_store %arg5[%c0_8, %c0_9], %10 {strides = array<i32>} : memref<256x128xf32, #tpu.memory_space<vmem>>, vector<256x128xf32>,
    return
  }
  func.func @transform_0(%arg0: i32) -> (i32, i32) {
    %c0_i32 = arith.constant 0 : i32
    %c0_i32_0 = arith.constant 0 : i32
    return %arg0, %c0_i32 : i32, i32
  }
  func.func @transform_1(%arg0: i32) -> (i32, i32) {
    %c0_i32 = arith.constant 0 : i32
    %c0_i32_0 = arith.constant 0 : i32
    %c0_i32_1 = arith.constant 0 : i32
    return %c0_i32, %c0_i32_0 : i32, i32
  }
  func.func @transform_2(%arg0: i32) -> (i32, i32) {
    %c0_i32 = arith.constant 0 : i32
    %c0_i32_0 = arith.constant 0 : i32
    %c0_i32_1 = arith.constant 0 : i32
    return %c0_i32, %c0_i32_0 : i32, i32
  }
  func.func @transform_3(%arg0: i32) -> (i32, i32) {
    %c0_i32 = arith.constant 0 : i32
    %c0_i32_0 = arith.constant 0 : i32
    %c0_i32_1 = arith.constant 0 : i32
    return %c0_i32, %c0_i32_0 : i32, i32
  }
  func.func @transform_4(%arg0: i32) -> (i32, i32) {
    %c0_i32 = arith.constant 0 : i32
    %c0_i32_0 = arith.constant 0 : i32
    return %arg0, %c0_i32 : i32, i32
  }
}

module attributes {stable_mosaic.version = 11 : i64} {
  func.func @_conv_bn_relu_kernel(%arg0: i32, %arg1: memref<256x288xbf16, #tpu.memory_space<vmem>>, %arg2: memref<288x128xbf16, #tpu.memory_space<vmem>>, %arg3: memref<1x128xf32, #tpu.memory_space<vmem>>, %arg4: memref<1x128xf32, #tpu.memory_space<vmem>>, %arg5: memref<256x128xf32, #tpu.memory_space<vmem>>) attributes {dimension_semantics = [#tpu.dimension_semantics<parallel>], iteration_bounds = array<i64: 2>, scalar_prefetch = 0 : i64, scratch_operands = 0 : i64, tpu.core_type = #tpu.core_type<tc>, window_params = [{transform_indices = @transform_0, window_bounds = array<i64: 256, 288>}, {pipeline_mode = #tpu.pipeline_mode<synchronous>, transform_indices = @transform_1, window_bounds = array<i64: 288, 128>}, {pipeline_mode = #tpu.pipeline_mode<synchronous>, transform_indices = @transform_2, window_bounds = array<i64: 1, 128>}, {pipeline_mode = #tpu.pipeline_mode<synchronous>, transform_indices = @transform_3, window_bounds = array<i64: 1, 128>}, {transform_indices = @transform_4, window_bounds = array<i64: 256, 128>}]} {
    %c0 = arith.constant 0 : index
    %c0_0 = arith.constant 0 : index
    %0 = vector.load %arg1[%c0, %c0_0] : memref<256x288xbf16, #tpu.memory_space<vmem>>, vector<256x288xbf16>
    %c0_1 = arith.constant 0 : index
    %c0_2 = arith.constant 0 : index
    %1 = vector.load %arg2[%c0_1, %c0_2] : memref<288x128xbf16, #tpu.memory_space<vmem>>, vector<288x128xbf16>
    %cst = arith.constant dense<0.000000e+00> : vector<256x128xf32>
    %2 = tpu.matmul %0, %1, %cst {dimension_numbers = #tpu.dot_dimension_numbers<[1], [0], [0], [1], [0, 0, 1, 1], [], []>} : vector<256x288xbf16>, vector<288x128xbf16>, vector<256x128xf32> -> vector<256x128xf32>
    %c0_3 = arith.constant 0 : index
    %c0_4 = arith.constant 0 : index
    %3 = vector.load %arg3[%c0_3, %c0_4] : memref<1x128xf32, #tpu.memory_space<vmem>>, vector<1x128xf32>
    %4 = vector.broadcast %3 : vector<1x128xf32> to vector<256x128xf32>
    %5 = arith.mulf %2, %4 : vector<256x128xf32>
    %c0_5 = arith.constant 0 : index
    %c0_6 = arith.constant 0 : index
    %6 = vector.load %arg4[%c0_5, %c0_6] : memref<1x128xf32, #tpu.memory_space<vmem>>, vector<1x128xf32>
    %7 = vector.broadcast %6 : vector<1x128xf32> to vector<256x128xf32>
    %8 = arith.addf %5, %7 : vector<256x128xf32>
    %cst_7 = arith.constant 0.000000e+00 : f32
    %9 = vector.broadcast %cst_7 : f32 to vector<256x128xf32>
    %10 = arith.maximumf %8, %9 : vector<256x128xf32>
    %c0_8 = arith.constant 0 : index
    %c0_9 = arith.constant 0 : index
    %11 = vector.load %arg5[%c0_8, %c0_9] : memref<256x128xf32, #tpu.memory_space<vmem>>, vector<256x128xf32>
    tpu.vector_store %arg5[%c0_8, %c0_9], %10 {strides = array<i32>} : memref<256x128xf32, #tpu.memory_space<vmem>>, vector<256x128xf32>,
    return
  }
  func.func @transform_0(%arg0: i32) -> (i32, i32) {
    %c0_i32 = arith.constant 0 : i32
    %c0_i32_0 = arith.constant 0 : i32
    return %arg0, %c0_i32 : i32, i32
  }
  func.func @transform_1(%arg0: i32) -> (i32, i32) {
    %c0_i32 = arith.constant 0 : i32
    %c0_i32_0 = arith.constant 0 : i32
    %c0_i32_1 = arith.constant 0 : i32
    return %c0_i32, %c0_i32_0 : i32, i32
  }
  func.func @transform_2(%arg0: i32) -> (i32, i32) {
    %c0_i32 = arith.constant 0 : i32
    %c0_i32_0 = arith.constant 0 : i32
    %c0_i32_1 = arith.constant 0 : i32
    return %c0_i32, %c0_i32_0 : i32, i32
  }
  func.func @transform_3(%arg0: i32) -> (i32, i32) {
    %c0_i32 = arith.constant 0 : i32
    %c0_i32_0 = arith.constant 0 : i32
    %c0_i32_1 = arith.constant 0 : i32
    return %c0_i32, %c0_i32_0 : i32, i32
  }
  func.func @transform_4(%arg0: i32) -> (i32, i32) {
    %c0_i32 = arith.constant 0 : i32
    %c0_i32_0 = arith.constant 0 : i32
    return %arg0, %c0_i32 : i32, i32
  }
}

module attributes {stable_mosaic.version = 11 : i64} {
  func.func @_conv_bn_relu_kernel(%arg0: i32, %arg1: memref<96x288xbf16, #tpu.memory_space<vmem>>, %arg2: memref<288x128xbf16, #tpu.memory_space<vmem>>, %arg3: memref<1x128xf32, #tpu.memory_space<vmem>>, %arg4: memref<1x128xf32, #tpu.memory_space<vmem>>, %arg5: memref<96x128xf32, #tpu.memory_space<vmem>>) attributes {dimension_semantics = [#tpu.dimension_semantics<parallel>], iteration_bounds = array<i64: 1>, scalar_prefetch = 0 : i64, scratch_operands = 0 : i64, tpu.core_type = #tpu.core_type<tc>, window_params = [{transform_indices = @transform_0, window_bounds = array<i64: 96, 288>}, {pipeline_mode = #tpu.pipeline_mode<synchronous>, transform_indices = @transform_1, window_bounds = array<i64: 288, 128>}, {pipeline_mode = #tpu.pipeline_mode<synchronous>, transform_indices = @transform_2, window_bounds = array<i64: 1, 128>}, {pipeline_mode = #tpu.pipeline_mode<synchronous>, transform_indices = @transform_3, window_bounds = array<i64: 1, 128>}, {transform_indices = @transform_4, window_bounds = array<i64: 96, 128>}]} {
    %c0 = arith.constant 0 : index
    %c0_0 = arith.constant 0 : index
    %0 = vector.load %arg1[%c0, %c0_0] : memref<96x288xbf16, #tpu.memory_space<vmem>>, vector<96x288xbf16>
    %c0_1 = arith.constant 0 : index
    %c0_2 = arith.constant 0 : index
    %1 = vector.load %arg2[%c0_1, %c0_2] : memref<288x128xbf16, #tpu.memory_space<vmem>>, vector<288x128xbf16>
    %cst = arith.constant dense<0.000000e+00> : vector<96x128xf32>
    %2 = tpu.matmul %0, %1, %cst {dimension_numbers = #tpu.dot_dimension_numbers<[1], [0], [0], [1], [0, 0, 1, 1], [], []>} : vector<96x288xbf16>, vector<288x128xbf16>, vector<96x128xf32> -> vector<96x128xf32>
    %c0_3 = arith.constant 0 : index
    %c0_4 = arith.constant 0 : index
    %3 = vector.load %arg3[%c0_3, %c0_4] : memref<1x128xf32, #tpu.memory_space<vmem>>, vector<1x128xf32>
    %4 = vector.broadcast %3 : vector<1x128xf32> to vector<96x128xf32>
    %5 = arith.mulf %2, %4 : vector<96x128xf32>
    %c0_5 = arith.constant 0 : index
    %c0_6 = arith.constant 0 : index
    %6 = vector.load %arg4[%c0_5, %c0_6] : memref<1x128xf32, #tpu.memory_space<vmem>>, vector<1x128xf32>
    %7 = vector.broadcast %6 : vector<1x128xf32> to vector<96x128xf32>
    %8 = arith.addf %5, %7 : vector<96x128xf32>
    %cst_7 = arith.constant 0.000000e+00 : f32
    %9 = vector.broadcast %cst_7 : f32 to vector<96x128xf32>
    %10 = arith.maximumf %8, %9 : vector<96x128xf32>
    %c0_8 = arith.constant 0 : index
    %c0_9 = arith.constant 0 : index
    %11 = vector.load %arg5[%c0_8, %c0_9] : memref<96x128xf32, #tpu.memory_space<vmem>>, vector<96x128xf32>
    tpu.vector_store %arg5[%c0_8, %c0_9], %10 {strides = array<i32>} : memref<96x128xf32, #tpu.memory_space<vmem>>, vector<96x128xf32>,
    return
  }
  func.func @transform_0(%arg0: i32) -> (i32, i32) {
    %c0_i32 = arith.constant 0 : i32
    %c0_i32_0 = arith.constant 0 : i32
    return %arg0, %c0_i32 : i32, i32
  }
  func.func @transform_1(%arg0: i32) -> (i32, i32) {
    %c0_i32 = arith.constant 0 : i32
    %c0_i32_0 = arith.constant 0 : i32
    %c0_i32_1 = arith.constant 0 : i32
    return %c0_i32, %c0_i32_0 : i32, i32
  }
  func.func @transform_2(%arg0: i32) -> (i32, i32) {
    %c0_i32 = arith.constant 0 : i32
    %c0_i32_0 = arith.constant 0 : i32
    %c0_i32_1 = arith.constant 0 : i32
    return %c0_i32, %c0_i32_0 : i32, i32
  }
  func.func @transform_3(%arg0: i32) -> (i32, i32) {
    %c0_i32 = arith.constant 0 : i32
    %c0_i32_0 = arith.constant 0 : i32
    %c0_i32_1 = arith.constant 0 : i32
    return %c0_i32, %c0_i32_0 : i32, i32
  }
  func.func @transform_4(%arg0: i32) -> (i32, i32) {
    %c0_i32 = arith.constant 0 : i32
    %c0_i32_0 = arith.constant 0 : i32
    return %arg0, %c0_i32 : i32, i32
  }
}

module attributes {stable_mosaic.version = 11 : i64} {
  func.func @_conv_bn_relu_kernel(%arg0: i32, %arg1: memref<16x288xbf16, #tpu.memory_space<vmem>>, %arg2: memref<288x128xbf16, #tpu.memory_space<vmem>>, %arg3: memref<1x128xf32, #tpu.memory_space<vmem>>, %arg4: memref<1x128xf32, #tpu.memory_space<vmem>>, %arg5: memref<16x128xf32, #tpu.memory_space<vmem>>) attributes {dimension_semantics = [#tpu.dimension_semantics<parallel>], iteration_bounds = array<i64: 1>, scalar_prefetch = 0 : i64, scratch_operands = 0 : i64, tpu.core_type = #tpu.core_type<tc>, window_params = [{transform_indices = @transform_0, window_bounds = array<i64: 16, 288>}, {pipeline_mode = #tpu.pipeline_mode<synchronous>, transform_indices = @transform_1, window_bounds = array<i64: 288, 128>}, {pipeline_mode = #tpu.pipeline_mode<synchronous>, transform_indices = @transform_2, window_bounds = array<i64: 1, 128>}, {pipeline_mode = #tpu.pipeline_mode<synchronous>, transform_indices = @transform_3, window_bounds = array<i64: 1, 128>}, {transform_indices = @transform_4, window_bounds = array<i64: 16, 128>}]} {
    %c0 = arith.constant 0 : index
    %c0_0 = arith.constant 0 : index
    %0 = vector.load %arg1[%c0, %c0_0] : memref<16x288xbf16, #tpu.memory_space<vmem>>, vector<16x288xbf16>
    %c0_1 = arith.constant 0 : index
    %c0_2 = arith.constant 0 : index
    %1 = vector.load %arg2[%c0_1, %c0_2] : memref<288x128xbf16, #tpu.memory_space<vmem>>, vector<288x128xbf16>
    %cst = arith.constant dense<0.000000e+00> : vector<16x128xf32>
    %2 = tpu.matmul %0, %1, %cst {dimension_numbers = #tpu.dot_dimension_numbers<[1], [0], [0], [1], [0, 0, 1, 1], [], []>} : vector<16x288xbf16>, vector<288x128xbf16>, vector<16x128xf32> -> vector<16x128xf32>
    %c0_3 = arith.constant 0 : index
    %c0_4 = arith.constant 0 : index
    %3 = vector.load %arg3[%c0_3, %c0_4] : memref<1x128xf32, #tpu.memory_space<vmem>>, vector<1x128xf32>
    %4 = vector.broadcast %3 : vector<1x128xf32> to vector<16x128xf32>
    %5 = arith.mulf %2, %4 : vector<16x128xf32>
    %c0_5 = arith.constant 0 : index
    %c0_6 = arith.constant 0 : index
    %6 = vector.load %arg4[%c0_5, %c0_6] : memref<1x128xf32, #tpu.memory_space<vmem>>, vector<1x128xf32>
    %7 = vector.broadcast %6 : vector<1x128xf32> to vector<16x128xf32>
    %8 = arith.addf %5, %7 : vector<16x128xf32>
    %cst_7 = arith.constant 0.000000e+00 : f32
    %9 = vector.broadcast %cst_7 : f32 to vector<16x128xf32>
    %10 = arith.maximumf %8, %9 : vector<16x128xf32>
    %c0_8 = arith.constant 0 : index
    %c0_9 = arith.constant 0 : index
    %11 = vector.load %arg5[%c0_8, %c0_9] : memref<16x128xf32, #tpu.memory_space<vmem>>, vector<16x128xf32>
    tpu.vector_store %arg5[%c0_8, %c0_9], %10 {strides = array<i32>} : memref<16x128xf32, #tpu.memory_space<vmem>>, vector<16x128xf32>,
    return
  }
  func.func @transform_0(%arg0: i32) -> (i32, i32) {
    %c0_i32 = arith.constant 0 : i32
    %c0_i32_0 = arith.constant 0 : i32
    return %arg0, %c0_i32 : i32, i32
  }
  func.func @transform_1(%arg0: i32) -> (i32, i32) {
    %c0_i32 = arith.constant 0 : i32
    %c0_i32_0 = arith.constant 0 : i32
    %c0_i32_1 = arith.constant 0 : i32
    return %c0_i32, %c0_i32_0 : i32, i32
  }
  func.func @transform_2(%arg0: i32) -> (i32, i32) {
    %c0_i32 = arith.constant 0 : i32
    %c0_i32_0 = arith.constant 0 : i32
    %c0_i32_1 = arith.constant 0 : i32
    return %c0_i32, %c0_i32_0 : i32, i32
  }
  func.func @transform_3(%arg0: i32) -> (i32, i32) {
    %c0_i32 = arith.constant 0 : i32
    %c0_i32_0 = arith.constant 0 : i32
    %c0_i32_1 = arith.constant 0 : i32
    return %c0_i32, %c0_i32_0 : i32, i32
  }
  func.func @transform_4(%arg0: i32) -> (i32, i32) {
    %c0_i32 = arith.constant 0 : i32
    %c0_i32_0 = arith.constant 0 : i32
    return %arg0, %c0_i32 : i32, i32
  }
}

</mosaic_0001>

<bundles_post_ra>
// kernel: _lambda_.4
= control target key start
LH: loop header
LB: loop body
LE: loop exit
PB: predicated region body
PF: predicated region fallthrough
CT: control target
= control target key end

     0   :  { %s1208_s15 = smov 0   ;;  %s1467_s0 = inlined_call_operand.vmem [shape: bf16[2048,189], index: 0, kind: input, shape index: {}]   ;;  %s1468_s1 = inlined_call_operand.vmem [shape: bf16[189,128], index: 1, kind: input, shape index: {}]   ;;  %s1469_s2 = inlined_call_operand.vmem [shape: f32[1,128], index: 2, kind: input, shape index: {}]   ;;  %s1470_s3 = inlined_call_operand.vmem [shape: f32[1,128], index: 3, kind: input, shape index: {}]   ;;  %s1471_s4 = inlined_call_operand.vmem [shape: f32[2048,128], index: 4, kind: output, shape index: {}]  }
   0x1 LB: > { %s902_s16 = sadd.s32 4294967295, %s1180_s15   ;;  %p906_p0 = scmp.ge.s32.totalorder %s1180_s15, 1  ;;  %s1180_s15 = sphi %s1208_s15, %s14_s15  }
   0x2   : > { %p164_p1 = scmp.lt.s32.totalorder %s1180_s15, 9 }
   0x4   : > { %p165_p2 = pnand %p906_p0, %p164_p1 }
   0x5   : > { %s907_s23 = sshll.u32 (!%p165_p2), %s902_s16, 5 }
   0x6   : > { %168 = sbr.rel (%p165_p2) target bundleno = 305 (0x131), region = 36  ;;  %p192_p3 = scmp.lt.s32.totalorder (!%p165_p2), %s907_s23, 255 }
   0xb   : > { %v1146_v0 = vld [vmem:[%s1468_s1 + $0x38] sm:$0xff]  ;;  %vm525_vm0 = vcmask 1045504   ;;  %vm526_vm1 = vcmask 1046528   ;;  %v1182_v4 = vmov 65535   ;;  %v1145_v6 = vld [vmem:[%s1468_s1 + $0x30] sm:$0xff]  ;;  %s1473_s23 = smov (!%p192_p3, %s907_s23), 255 }
   0xc   : > { %v1086_v1 = vld [vmem:[%s1468_s1 + $0x58] sm:$0xf]  ;;  %v1150_v2 = vld [vmem:[%s1468_s1 + $0x58] sm:$0x70]  ;;  %532 = vmatpush.bf16.msra.mxu0 %v1146_v0  ;;  %1151 = vmatpush.bf16.msra.mxu2 %v1146_v0  ;;  %v527_v5 = vsel %vm525_vm0, 4294967295, %v1182_v4  ;;  %v1149_v9 = vld [vmem:[%s1468_s1 + $0x50] sm:$0xff] }
   0xd   : > { %v1087_v3 = vor.u32 %v1150_v2, %v1086_v1  ;;  %v528_v7 = vsel %vm526_vm1, %v527_v5, 0  ;;  %v1144_v10 = vld [vmem:[%s1468_s1 + $0x28] sm:$0xff]  ;;  %s1106_s30 = sshll.u32 %s1473_s23, 3  ;;  %v1143_v12 = vld [vmem:[%s1468_s1 + $0x20] sm:$0xff]  ;;  %v1142_v14 = vld [vmem:[%s1468_s1 + $0x18] sm:$0xff]  ;;  %vm476_vm2 = vcmask 498688  }
   0xe   : > { %v1148_v11 = vld [vmem:[%s1468_s1 + $0x48] sm:$0xff]  ;;  %s1248_s11 = scalar_lea.vmem %s1467_s0, %s1106_s30  ;;  %v1147_v13 = vld [vmem:[%s1468_s1 + $0x40] sm:$0xff]  ;;  %v1141_v20 = vld [vmem:[%s1468_s1 + $0x10] sm:$0xff]  ;;  %s1362_s5 = scalar_lea.vmem %s1471_s4, %s1106_s30 }
   0xf   : > { %v530_v8 = vand.u32 %v1087_v3, %v528_v7  ;;  %v1107_v15 = vld [vmem:[%s1248_s11 + $0x4] sm:$0xf]  ;;  %v916_v16 = vld [vmem:[%s1248_s11 + $0x8] sm:$0xf0]  ;;  %v1125_v17 = vld [vmem:[%s1248_s11 + $0x94] sm:$0xf] }
  0x10   : > { %533 = vmatpush.bf16.msra.mxu0 %v1145_v6  ;;  %1152 = vmatpush.bf16.msra.mxu2 %v1145_v6  ;;  %v988_v18 = vld [vmem:[%s1248_s11 + $0x98] sm:$0xf0]  ;;  %v919_v19 = vor.u32 %v1107_v15, %v916_v16  ;;  %v1140_v22 = vld [vmem:[%s1468_s1 + $0x8] sm:$0xff]  ;;  %v1139_v23 = vld [vmem:[%s1468_s1] sm:$0xff] }
  0x11   : > { %625 = vmatpush.bf16.msra.mxu1 %v530_v8  ;;  %1159 = vmatpush.bf16.msra.mxu3 %v530_v8  ;;  %v991_v21 = vor.u32 %v1125_v17, %v988_v18  ;;  %v914_v24 = vld [vmem:[%s1248_s11] sm:$0xf]  ;;  %v1108_v25 = vld [vmem:[%s1248_s11 + $0x4] sm:$0xf0]  ;;  %v1109_v30 = vld [vmem:[%s1248_s11 + $0x14] sm:$0xf] }
  0x12   : > { %v978_v26 = vld [vmem:[%s1248_s11 + $0x80] sm:$0xf]  ;;  %v1124_v27 = vld [vmem:[%s1248_s11 + $0x84] sm:$0xf0]  ;;  %v915_v28 = vor.u32 %v1108_v25, %v914_v24  ;;  %v924_v31 = vld [vmem:[%s1248_s11 + $0x18] sm:$0xf0] }
  0x13   : > { %v979_v29 = vor.u32 %v1124_v27, %v978_v26  ;;  %v1127_v32 = vld [vmem:[%s1248_s11 + $0xa4] sm:$0xf]  ;;  %v996_v33 = vld [vmem:[%s1248_s11 + $0xa8] sm:$0xf0]  ;;  %v927_v34 = vor.u32 %v1109_v30, %v924_v31  ;;  %v922_v36 = vld [vmem:[%s1248_s11 + $0x10] sm:$0xf] }
  0x14   : > { %534 = vmatpush.bf16.msra.mxu0 %v1144_v10  ;;  %1153 = vmatpush.bf16.msra.mxu2 %v1144_v10  ;;  %v999_v35 = vor.u32 %v1127_v32, %v996_v33  ;;  %v1110_v37 = vld [vmem:[%s1248_s11 + $0x14] sm:$0xf0]  ;;  %v986_v38 = vld [vmem:[%s1248_s11 + $0x90] sm:$0xf]  ;;  %v1111_v42 = vld [vmem:[%s1248_s11 + $0x24] sm:$0xf] }
  0x15   : > { %626 = vmatpush.bf16.msra.mxu1 %v1149_v9  ;;  %1160 = vmatpush.bf16.msra.mxu3 %v1149_v9  ;;  %v1126_v39 = vld [vmem:[%s1248_s11 + $0x94] sm:$0xf0]  ;;  %v923_v40 = vor.u32 %v1110_v37, %v922_v36  ;;  %v932_v43 = vld [vmem:[%s1248_s11 + $0x28] sm:$0xf0]  ;;  %v1129_v44 = vld [vmem:[%s1248_s11 + $0xb4] sm:$0xf] }
  0x16   : > { %v987_v41 = vor.u32 %v1126_v39, %v986_v38  ;;  %v1004_v45 = vld [vmem:[%s1248_s11 + $0xb8] sm:$0xf0]  ;;  %v935_v46 = vor.u32 %v1111_v42, %v932_v43  ;;  %v930_v48 = vld [vmem:[%s1248_s11 + $0x20] sm:$0xf]  ;;  %v1112_v49 = vld [vmem:[%s1248_s11 + $0x24] sm:$0xf0] }
  0x17   : > { %v1007_v47 = vor.u32 %v1129_v44, %v1004_v45  ;;  %v994_v50 = vld [vmem:[%s1248_s11 + $0xa0] sm:$0xf]  ;;  %v1128_v51 = vld [vmem:[%s1248_s11 + $0xa4] sm:$0xf0]  ;;  %v931_v52 = vor.u32 %v1112_v49, %v930_v48  ;;  %v1113_v54 = vld [vmem:[%s1248_s11 + $0x34] sm:$0xf] }
  0x18   : > { %535 = vmatpush.bf16.msra.mxu0 %v1143_v12  ;;  %1154 = vmatpush.bf16.msra.mxu2 %v1143_v12  ;;  %v995_v53 = vor.u32 %v1128_v51, %v994_v50  ;;  %v940_v55 = vld [vmem:[%s1248_s11 + $0x38] sm:$0xf0]  ;;  %v1131_v56 = vld [vmem:[%s1248_s11 + $0xc4] sm:$0xf]  ;;  %v1012_v57 = vld [vmem:[%s1248_s11 + $0xc8] sm:$0xf0] }
  0x19   : > { %627 = vmatpush.bf16.msra.mxu1 %v1148_v11  ;;  %1161 = vmatpush.bf16.msra.mxu3 %v1148_v11  ;;  %v943_v58 = vor.u32 %v1113_v54, %v940_v55  ;;  %v1015_v59 = vor.u32 %v1131_v56, %v1012_v57  ;;  %v938_v60 = vld [vmem:[%s1248_s11 + $0x30] sm:$0xf]  ;;  %v1114_v61 = vld [vmem:[%s1248_s11 + $0x34] sm:$0xf0]  ;;  %v1115_v2 = vld [vmem:[%s1248_s11 + $0x44] sm:$0xf] }
  0x1a   : > { %v1002_v62 = vld [vmem:[%s1248_s11 + $0xb0] sm:$0xf]  ;;  %v1130_v63 = vld [vmem:[%s1248_s11 + $0xb4] sm:$0xf0]  ;;  %v939_v0 = vor.u32 %v1114_v61, %v938_v60  ;;  %v948_v3 = vld [vmem:[%s1248_s11 + $0x48] sm:$0xf0] }
  0x1b   : > { %v1003_v1 = vor.u32 %v1130_v63, %v1002_v62  ;;  %v1133_v4 = vld [vmem:[%s1248_s11 + $0xd4] sm:$0xf]  ;;  %v1020_v5 = vld [vmem:[%s1248_s11 + $0xd8] sm:$0xf0]  ;;  %v951_v6 = vor.u32 %v1115_v2, %v948_v3  ;;  %v946_v8 = vld [vmem:[%s1248_s11 + $0x40] sm:$0xf] }
  0x1c   : > { %536 = vmatpush.bf16.msra.mxu0 %v1142_v14  ;;  %1155 = vmatpush.bf16.msra.mxu2 %v1142_v14  ;;  %v1023_v7 = vor.u32 %v1133_v4, %v1020_v5  ;;  %v1116_v9 = vld [vmem:[%s1248_s11 + $0x44] sm:$0xf0]  ;;  %v1010_v10 = vld [vmem:[%s1248_s11 + $0xc0] sm:$0xf]  ;;  %v1117_v14 = vld [vmem:[%s1248_s11 + $0x54] sm:$0xf] }
  0x1d   : > { %628 = vmatpush.bf16.msra.mxu1 %v1147_v13  ;;  %1162 = vmatpush.bf16.msra.mxu3 %v1147_v13  ;;  %v1132_v11 = vld [vmem:[%s1248_s11 + $0xc4] sm:$0xf0]  ;;  %v947_v12 = vor.u32 %v1116_v9, %v946_v8  ;;  %v956_v15 = vld [vmem:[%s1248_s11 + $0x58] sm:$0xf0]  ;;  %v1135_v16 = vld [vmem:[%s1248_s11 + $0xe4] sm:$0xf] }
  0x1e   : > { %v1011_v13 = vor.u32 %v1132_v11, %v1010_v10  ;;  %v1028_v17 = vld [vmem:[%s1248_s11 + $0xe8] sm:$0xf0]  ;;  %v959_v18 = vor.u32 %v1117_v14, %v956_v15  ;;  %v1119_v26 = vld [vmem:[%s1248_s11 + $0x64] sm:$0xf]  ;;  %v962_v32 = vld [vmem:[%s1248_s11 + $0x60] sm:$0xf] }
  0x1f   : > { %v964_v27 = vld [vmem:[%s1248_s11 + $0x68] sm:$0xf0]  ;;  %v1120_v33 = vld [vmem:[%s1248_s11 + $0x64] sm:$0xf0]  ;;  %v1121_v38 = vld [vmem:[%s1248_s11 + $0x74] sm:$0xf] }
  0x20   : > { %1088 = vmatmul.msk.bf16.vlgmr.msra.gmra.mxu1 %vm476_vm2, %v919_v19  ;;  %537 = vmatpush.bf16.msra.mxu0 %v1141_v20  ;;  %v1031_v19 = vor.u32 %v1135_v16, %v1028_v17  ;;  %v967_v30 = vor.u32 %v1119_v26, %v964_v27  ;;  %v963_v36 = vor.u32 %v1120_v33, %v962_v32  ;;  %v972_v39 = vld [vmem:[%s1248_s11 + $0x78] sm:$0xf0]  ;;  %v1122_v42 = vld [vmem:[%s1248_s11 + $0x74] sm:$0xf0]  ;;  %v1034_v43 = vld [vmem:[%s1248_s11 + $0xf0] sm:$0xf] }
  0x21   : > { %1097 = vmatmul.msk.bf16.vlgmr.msra.gmra.mxu3 %vm476_vm2, %v991_v21  ;;  %1156 = vmatpush.bf16.msra.mxu2 %v1141_v20  ;;  %v954_v20 = vld [vmem:[%s1248_s11 + $0x50] sm:$0xf]  ;;  %v1118_v21 = vld [vmem:[%s1248_s11 + $0x54] sm:$0xf0]  ;;  %v980_v48 = vld [vmem:[%s1248_s11 + $0x88] sm:$0xf0] }
  0x22   : > { %v955_v24 = vor.u32 %v1118_v21, %v954_v20  ;;  %v1138_v44 = vld [vmem:[%s1248_s11 + $0xf4] sm:$0xf0]  ;;  %v1353_v56 = vld [vmem:[%s1470_s3] ss:$0 sm:$0xff] }
  0x24   : > { %538 = vmatpush.bf16.msra.mxu0 %v1140_v22 }
  0x25   : > { %1157 = vmatpush.bf16.msra.mxu2 %v1140_v22  ;;  %v1018_v22 = vld [vmem:[%s1248_s11 + $0xd0] sm:$0xf] }
  0x28   : > { %539 = vmatpush.bf16.msra.mxu0 %v1139_v23 }
  0x29   : > { %1158 = vmatpush.bf16.msra.mxu2 %v1139_v23  ;;  %v1134_v23 = vld [vmem:[%s1248_s11 + $0xd4] sm:$0xf0] }
  0x2a   : > { %v1019_v25 = vor.u32 %v1134_v23, %v1018_v22 }
  0x2b   : > { %540 = vmatmul.bf16.vlgmr.msra.gmra.mxu0 %v915_v28  ;;  %v1137_v28 = vld [vmem:[%s1248_s11 + $0xf4] sm:$0xf] }
  0x2c   : > { %580 = vmatmul.bf16.vlgmr.msra.gmra.mxu2 %v979_v29  ;;  %v1036_v29 = vld [vmem:[%s1248_s11 + $0xf8] sm:$0xf0] }
  0x2d   : > { %v1039_v31 = vor.u32 %v1137_v28, %v1036_v29 }
  0x30   : > { %1089 = vmatmul.msk.bf16.gmra.mxu1 %vm476_vm2, %v927_v34  ;;  %v1026_v34 = vld [vmem:[%s1248_s11 + $0xe0] sm:$0xf] }
  0x31   : > { %1098 = vmatmul.msk.bf16.gmra.mxu3 %vm476_vm2, %v999_v35  ;;  %v1136_v35 = vld [vmem:[%s1248_s11 + $0xe4] sm:$0xf0] }
  0x32   : > { %v1027_v37 = vor.u32 %v1136_v35, %v1026_v34 }
  0x3b   : > { %545 = vmatmul.bf16.gmra.mxu0 %v923_v40  ;;  %v975_v40 = vor.u32 %v1121_v38, %v972_v39 }
  0x3c   : > { %585 = vmatmul.bf16.gmra.mxu2 %v987_v41  ;;  %v970_v41 = vld [vmem:[%s1248_s11 + $0x70] sm:$0xf] }
  0x3d   : > { %v971_v45 = vor.u32 %v1122_v42, %v970_v41 }
  0x40   : > { %1090 = vmatmul.msk.bf16.gmra.mxu1 %vm476_vm2, %v935_v46  ;;  %v1035_v46 = vor.u32 %v1138_v44, %v1034_v43 }
  0x41   : > { %1099 = vmatmul.msk.bf16.gmra.mxu3 %vm476_vm2, %v1007_v47  ;;  %v1123_v47 = vld [vmem:[%s1248_s11 + $0x84] sm:$0xf] }
  0x42   : > { %v983_v49 = vor.u32 %v1123_v47, %v980_v48 }
  0x4b   : > { %550 = vmatmul.bf16.gmra.mxu0 %v931_v52 }
  0x4c   : > { %590 = vmatmul.bf16.gmra.mxu2 %v995_v53  ;;  %v1348_v53 = vld [vmem:[%s1469_s2] ss:$0 sm:$0xff] }
  0x50   : > { %1091 = vmatmul.msk.bf16.gmra.mxu1 %vm476_vm2, %v943_v58 }
  0x51   : > { %1100 = vmatmul.msk.bf16.gmra.mxu3 %vm476_vm2, %v1015_v59 }
  0x5b   : > { %555 = vmatmul.bf16.gmra.mxu0 %v939_v0 }
  0x5c   : > { %595 = vmatmul.bf16.gmra.mxu2 %v1003_v1 }
  0x60   : > { %1092 = vmatmul.msk.bf16.gmra.mxu1 %vm476_vm2, %v951_v6 }
  0x61   : > { %1101 = vmatmul.msk.bf16.gmra.mxu3 %vm476_vm2, %v1023_v7 }
  0x6b   : > { %560 = vmatmul.bf16.gmra.mxu0 %v947_v12 }
  0x6c   : > { %600 = vmatmul.bf16.gmra.mxu2 %v1011_v13 }
  0x70   : > { %1093 = vmatmul.msk.bf16.gmra.mxu1 %vm476_vm2, %v959_v18 }
  0x71   : > { %1102 = vmatmul.msk.bf16.gmra.mxu3 %vm476_vm2, %v1031_v19 }
  0x7b   : > { %565 = vmatmul.bf16.gmra.mxu0 %v955_v24 }
  0x7c   : > { %605 = vmatmul.bf16.gmra.mxu2 %v1019_v25 }
  0x80   : > { %1094 = vmatmul.msk.bf16.gmra.mxu1 %vm476_vm2, %v967_v30 }
  0x81   : > { %1103 = vmatmul.msk.bf16.gmra.mxu3 %vm476_vm2, %v1039_v31 }
  0x8b   : > { %570 = vmatmul.bf16.gmra.mxu0 %v963_v36 }
  0x8c   : > { %610 = vmatmul.bf16.gmra.mxu2 %v1027_v37 }
  0x90   : > { %1095 = vmatmul.msk.bf16.gmra.mxu1 %vm476_vm2, %v975_v40 }
  0x9b   : > { %575 = vmatmul.bf16.gmra.mxu0 %v971_v45 }
  0x9c   : > { %615 = vmatmul.bf16.gmra.mxu2 %v1035_v46 }
  0x9d   : > { %v630_v50 = vpop.f32.mrf.mxu1 }
  0xa0   : > { %1096 = vmatmul.msk.bf16.gmra.mxu1 %vm476_vm2, %v983_v49 }
  0xa4   : > { %v675_v52 = vpop.f32.mrf.mxu3 }
  0xa5   : > { %v632_v51 = vpop.f32.mrf.mxu1 }
  0xa8   : > { %v541_v54 = vpop.f32.mrf.mxu0 }
  0xa9   : > { %v631_v55 = vadd.f32 %v630_v50, %v541_v54 }
  0xab   : > { %v714_v57 = vmul.f32 %v1348_v53, %v631_v55 }
  0xac   : > { %v677_v62 = vpop.f32.mrf.mxu3 }
  0xad   : > { %v635_v58 = vpop.f32.mrf.mxu1  ;;  %v750_v59 = vadd.f32 %v1353_v56, %v714_v57 }
  0xaf   : > { %v782_v60 = vmax.f32 %v750_v59, 0.0  ;;  %v1364_v61 = vpop.f32.mrf.mxu2 }
  0xb0   : > { %v543_v63 = vpop.f32.mrf.mxu0 }
  0xb1   : > { %814 = vst [vmem:[%s1362_s5] sm:$0xff] %v782_v60  ;;  %v633_v0 = vadd.f32 %v632_v51, %v543_v63 }
  0xb3   : > { %v715_v1 = vmul.f32 %v1348_v53, %v633_v0 }
  0xb4   : > { %v680_v8 = vpop.f32.mrf.mxu3 }
  0xb5   : > { %v637_v2 = vpop.f32.mrf.mxu1  ;;  %v751_v3 = vadd.f32 %v1353_v56, %v715_v1 }
  0xb7   : > { %v783_v4 = vmax.f32 %v751_v3, 0.0  ;;  %v1369_v5 = vpop.f32.mrf.mxu2 }
  0xb8   : > { %v546_v6 = vpop.f32.mrf.mxu0 }
  0xb9   : > { %815 = vst [vmem:[%s1362_s5 + $0x8] sm:$0xff] %v783_v4  ;;  %v636_v7 = vadd.f32 %v635_v58, %v546_v6 }
  0xbb   : > { %v716_v9 = vmul.f32 %v1348_v53, %v636_v7 }
  0xbc   : > { %v682_v19 = vpop.f32.mrf.mxu3 }
  0xbd   : > { %v640_v10 = vpop.f32.mrf.mxu1  ;;  %v752_v11 = vadd.f32 %v1353_v56, %v716_v9 }
  0xbf   : > { %v784_v12 = vmax.f32 %v752_v11, 0.0  ;;  %v586_v13 = vpop.f32.mrf.mxu2 }
  0xc0   : > { %v676_v14 = vadd.f32 %v675_v52, %v586_v13  ;;  %v548_v15 = vpop.f32.mrf.mxu0 }
  0xc1   : > { %816 = vst [vmem:[%s1362_s5 + $0x10] sm:$0xff] %v784_v12  ;;  %v638_v16 = vadd.f32 %v637_v2, %v548_v15 }
  0xc2   : > { %v732_v17 = vmul.f32 %v1348_v53, %v676_v14 }
  0xc3   : > { %v717_v18 = vmul.f32 %v1348_v53, %v638_v16 }
  0xc4   : > { %v768_v20 = vadd.f32 %v1353_v56, %v732_v17  ;;  %v685_v34 = vpop.f32.mrf.mxu3 }
  0xc5   : > { %v642_v21 = vpop.f32.mrf.mxu1  ;;  %v753_v22 = vadd.f32 %v1353_v56, %v717_v18 }
  0xc6   : > { %v800_v23 = vmax.f32 %v768_v20, 0.0 }
  0xc7   : > { %v785_v24 = vmax.f32 %v753_v22, 0.0  ;;  %v588_v25 = vpop.f32.mrf.mxu2 }
  0xc8   : > { %832 = vst [vmem:[%s1362_s5 + $0x90] sm:$0xff] %v800_v23  ;;  %v678_v26 = vadd.f32 %v677_v62, %v588_v25  ;;  %v551_v27 = vpop.f32.mrf.mxu0 }
  0xc9   : > { %817 = vst [vmem:[%s1362_s5 + $0x18] sm:$0xff] %v785_v24  ;;  %v641_v28 = vadd.f32 %v640_v10, %v551_v27 }
  0xca   : > { %v733_v29 = vmul.f32 %v1348_v53, %v678_v26 }
  0xcb   : > { %v718_v30 = vmul.f32 %v1348_v53, %v641_v28 }
  0xcc   : > { %v769_v31 = vadd.f32 %v1353_v56, %v733_v29  ;;  %v687_v49 = vpop.f32.mrf.mxu3 }
  0xcd   : > { %v645_v32 = vpop.f32.mrf.mxu1  ;;  %v754_v33 = vadd.f32 %v1353_v56, %v718_v30 }
  0xce   : > { %v801_v35 = vmax.f32 %v769_v31, 0.0 }
  0xcf   : > { %v786_v36 = vmax.f32 %v754_v33, 0.0  ;;  %v591_v37 = vpop.f32.mrf.mxu2 }
  0xd0   : > { %833 = vst [vmem:[%s1362_s5 + $0x98] sm:$0xff] %v801_v35  ;;  %v681_v38 = vadd.f32 %v680_v8, %v591_v37  ;;  %v553_v39 = vpop.f32.mrf.mxu0 }
  0xd1   : > { %818 = vst [vmem:[%s1362_s5 + $0x20] sm:$0xff] %v786_v36  ;;  %v643_v40 = vadd.f32 %v642_v21, %v553_v39 }
  0xd2   : > { %v734_v41 = vmul.f32 %v1348_v53, %v681_v38 }
  0xd3   : > { %v719_v42 = vmul.f32 %v1348_v53, %v643_v40 }
  0xd4   : > { %v770_v43 = vadd.f32 %v1353_v56, %v734_v41  ;;  %v690_v3 = vpop.f32.mrf.mxu3 }
  0xd5   : > { %v647_v44 = vpop.f32.mrf.mxu1  ;;  %v755_v45 = vadd.f32 %v1353_v56, %v719_v42 }
  0xd6   : > { %v802_v46 = vmax.f32 %v770_v43, 0.0 }
  0xd7   : > { %v787_v47 = vmax.f32 %v755_v45, 0.0  ;;  %v593_v48 = vpop.f32.mrf.mxu2 }
  0xd8   : > { %834 = vst [vmem:[%s1362_s5 + $0xa0] sm:$0xff] %v802_v46  ;;  %v683_v50 = vadd.f32 %v682_v19, %v593_v48  ;;  %v556_v51 = vpop.f32.mrf.mxu0 }
  0xd9   : > { %819 = vst [vmem:[%s1362_s5 + $0x28] sm:$0xff] %v787_v47  ;;  %v646_v52 = vadd.f32 %v645_v32, %v556_v51 }
  0xda   : > { %v735_v54 = vmul.f32 %v1348_v53, %v683_v50 }
  0xdb   : > { %v720_v55 = vmul.f32 %v1348_v53, %v646_v52 }
  0xdc   : > { %v771_v57 = vadd.f32 %v1353_v56, %v735_v54  ;;  %v692_v18 = vpop.f32.mrf.mxu3 }
  0xdd   : > { %v650_v58 = vpop.f32.mrf.mxu1  ;;  %v756_v59 = vadd.f32 %v1353_v56, %v720_v55 }
  0xde   : > { %v803_v60 = vmax.f32 %v771_v57, 0.0 }
  0xdf   : > { %v788_v62 = vmax.f32 %v756_v59, 0.0  ;;  %v596_v63 = vpop.f32.mrf.mxu2 }
  0xe0   : > { %835 = vst [vmem:[%s1362_s5 + $0xa8] sm:$0xff] %v803_v60  ;;  %v686_v0 = vadd.f32 %v685_v34, %v596_v63  ;;  %v558_v1 = vpop.f32.mrf.mxu0 }
  0xe1   : > { %820 = vst [vmem:[%s1362_s5 + $0x30] sm:$0xff] %v788_v62  ;;  %v648_v2 = vadd.f32 %v647_v44, %v558_v1 }
  0xe2   : > { %v736_v4 = vmul.f32 %v1348_v53, %v686_v0 }
  0xe3   : > { %v721_v6 = vmul.f32 %v1348_v53, %v648_v2 }
  0xe4   : > { %v772_v7 = vadd.f32 %v1353_v56, %v736_v4  ;;  %v695_v33 = vpop.f32.mrf.mxu3 }
  0xe5   : > { %v652_v8 = vpop.f32.mrf.mxu1  ;;  %v757_v9 = vadd.f32 %v1353_v56, %v721_v6 }
  0xe6   : > { %v804_v10 = vmax.f32 %v772_v7, 0.0 }
  0xe7   : > { %v789_v11 = vmax.f32 %v757_v9, 0.0  ;;  %v598_v12 = vpop.f32.mrf.mxu2 }
  0xe8   : > { %836 = vst [vmem:[%s1362_s5 + $0xb0] sm:$0xff] %v804_v10  ;;  %v688_v13 = vadd.f32 %v687_v49, %v598_v12  ;;  %v561_v14 = vpop.f32.mrf.mxu0 }
  0xe9   : > { %821 = vst [vmem:[%s1362_s5 + $0x38] sm:$0xff] %v789_v11  ;;  %v651_v15 = vadd.f32 %v650_v58, %v561_v14 }
  0xea   : > { %v737_v16 = vmul.f32 %v1348_v53, %v688_v13 }
  0xeb   : > { %v722_v17 = vmul.f32 %v1348_v53, %v651_v15 }
  0xec   : > { %v773_v19 = vadd.f32 %v1353_v56, %v737_v16  ;;  %v697_v48 = vpop.f32.mrf.mxu3 }
  0xed   : > { %v655_v20 = vpop.f32.mrf.mxu1  ;;  %v758_v21 = vadd.f32 %v1353_v56, %v722_v17 }
  0xee   : > { %v805_v22 = vmax.f32 %v773_v19, 0.0 }
  0xef   : > { %v790_v23 = vmax.f32 %v758_v21, 0.0  ;;  %v601_v24 = vpop.f32.mrf.mxu2 }
  0xf0   : > { %837 = vst [vmem:[%s1362_s5 + $0xb8] sm:$0xff] %v805_v22  ;;  %v691_v25 = vadd.f32 %v690_v3, %v601_v24  ;;  %v563_v26 = vpop.f32.mrf.mxu0 }
  0xf1   : > { %822 = vst [vmem:[%s1362_s5 + $0x40] sm:$0xff] %v790_v23  ;;  %v653_v27 = vadd.f32 %v652_v8, %v563_v26 }
  0xf2   : > { %v738_v28 = vmul.f32 %v1348_v53, %v691_v25 }
  0xf3   : > { %v723_v29 = vmul.f32 %v1348_v53, %v653_v27 }
  0xf4   : > { %v774_v30 = vadd.f32 %v1353_v56, %v738_v28  ;;  %v700_v1 = vpop.f32.mrf.mxu3 }
  0xf5   : > { %v657_v31 = vpop.f32.mrf.mxu1  ;;  %v759_v32 = vadd.f32 %v1353_v56, %v723_v29 }
  0xf6   : > { %v806_v34 = vmax.f32 %v774_v30, 0.0 }
  0xf7   : > { %v791_v35 = vmax.f32 %v759_v32, 0.0  ;;  %v603_v36 = vpop.f32.mrf.mxu2 }
  0xf8   : > { %838 = vst [vmem:[%s1362_s5 + $0xc0] sm:$0xff] %v806_v34  ;;  %v693_v37 = vadd.f32 %v692_v18, %v603_v36  ;;  %v566_v38 = vpop.f32.mrf.mxu0 }
  0xf9   : > { %823 = vst [vmem:[%s1362_s5 + $0x48] sm:$0xff] %v791_v35  ;;  %v656_v39 = vadd.f32 %v655_v20, %v566_v38 }
  0xfa   : > { %v739_v40 = vmul.f32 %v1348_v53, %v693_v37 }
  0xfb   : > { %v724_v41 = vmul.f32 %v1348_v53, %v656_v39 }
  0xfc   : > { %v775_v42 = vadd.f32 %v1353_v56, %v739_v40  ;;  %v702_v16 = vpop.f32.mrf.mxu3 }
  0xfd   : > { %v660_v43 = vpop.f32.mrf.mxu1  ;;  %v760_v44 = vadd.f32 %v1353_v56, %v724_v41 }
  0xfe   : > { %v807_v45 = vmax.f32 %v775_v42, 0.0 }
  0xff   : > { %v792_v46 = vmax.f32 %v760_v44, 0.0  ;;  %v606_v47 = vpop.f32.mrf.mxu2 }
 0x100   : > { %839 = vst [vmem:[%s1362_s5 + $0xc8] sm:$0xff] %v807_v45  ;;  %v696_v49 = vadd.f32 %v695_v33, %v606_v47  ;;  %v568_v50 = vpop.f32.mrf.mxu0 }
 0x101   : > { %824 = vst [vmem:[%s1362_s5 + $0x50] sm:$0xff] %v792_v46  ;;  %v658_v51 = vadd.f32 %v657_v31, %v568_v50 }
 0x102   : > { %v740_v52 = vmul.f32 %v1348_v53, %v696_v49 }
 0x103   : > { %v725_v54 = vmul.f32 %v1348_v53, %v658_v51 }
 0x104   : > { %v776_v55 = vadd.f32 %v1353_v56, %v740_v52  ;;  %v705_v31 = vpop.f32.mrf.mxu3 }
 0x105   : > { %v662_v57 = vpop.f32.mrf.mxu1  ;;  %v761_v58 = vadd.f32 %v1353_v56, %v725_v54 }
 0x106   : > { %v808_v59 = vmax.f32 %v776_v55, 0.0 }
 0x107   : > { %v793_v60 = vmax.f32 %v761_v58, 0.0  ;;  %v608_v62 = vpop.f32.mrf.mxu2 }
 0x108   : > { %840 = vst [vmem:[%s1362_s5 + $0xd0] sm:$0xff] %v808_v59  ;;  %v698_v63 = vadd.f32 %v697_v48, %v608_v62  ;;  %v571_v0 = vpop.f32.mrf.mxu0 }
 0x109   : > { %825 = vst [vmem:[%s1362_s5 + $0x58] sm:$0xff] %v793_v60  ;;  %v661_v2 = vadd.f32 %v660_v43, %v571_v0 }
 0x10a   : > { %v741_v3 = vmul.f32 %v1348_v53, %v698_v63 }
 0x10b   : > { %v726_v4 = vmul.f32 %v1348_v53, %v661_v2 }
 0x10c   : > { %v777_v6 = vadd.f32 %v1353_v56, %v741_v3  ;;  %v707_v49 = vpop.f32.mrf.mxu3 }
 0x10d   : > { %v665_v7 = vpop.f32.mrf.mxu1  ;;  %v762_v8 = vadd.f32 %v1353_v56, %v726_v4 }
 0x10e   : > { %v809_v9 = vmax.f32 %v777_v6, 0.0 }
 0x10f   : > { %v794_v10 = vmax.f32 %v762_v8, 0.0  ;;  %v611_v11 = vpop.f32.mrf.mxu2 }
 0x110   : > { %841 = vst [vmem:[%s1362_s5 + $0xd8] sm:$0xff] %v809_v9  ;;  %v701_v12 = vadd.f32 %v700_v1, %v611_v11  ;;  %v573_v13 = vpop.f32.mrf.mxu0 }
 0x111   : > { %826 = vst [vmem:[%s1362_s5 + $0x60] sm:$0xff] %v794_v10  ;;  %v663_v14 = vadd.f32 %v662_v57, %v573_v13 }
 0x112   : > { %v742_v15 = vmul.f32 %v1348_v53, %v701_v12 }
 0x113   : > { %v727_v17 = vmul.f32 %v1348_v53, %v663_v14 }
 0x114   : > { %v778_v18 = vadd.f32 %v1353_v56, %v742_v15 }
 0x115   : > { %v667_v19 = vpop.f32.mrf.mxu1  ;;  %v763_v20 = vadd.f32 %v1353_v56, %v727_v17 }
 0x116   : > { %v810_v21 = vmax.f32 %v778_v18, 0.0 }
 0x117   : > { %v795_v22 = vmax.f32 %v763_v20, 0.0  ;;  %v613_v23 = vpop.f32.mrf.mxu2 }
 0x118   : > { %842 = vst [vmem:[%s1362_s5 + $0xe0] sm:$0xff] %v810_v21  ;;  %v703_v24 = vadd.f32 %v702_v16, %v613_v23  ;;  %v576_v25 = vpop.f32.mrf.mxu0 }
 0x119   : > { %827 = vst [vmem:[%s1362_s5 + $0x68] sm:$0xff] %v795_v22  ;;  %v666_v26 = vadd.f32 %v665_v7, %v576_v25 }
 0x11a   : > { %v743_v27 = vmul.f32 %v1348_v53, %v703_v24 }
 0x11b   : > { %v728_v28 = vmul.f32 %v1348_v53, %v666_v26 }
 0x11c   : > { %v779_v29 = vadd.f32 %v1353_v56, %v743_v27 }
 0x11d   : > { %v670_v30 = vpop.f32.mrf.mxu1  ;;  %v764_v32 = vadd.f32 %v1353_v56, %v728_v28 }
 0x11e   : > { %v671_v33 = vadd.f32 %v670_v30, %v1364_v61  ;;  %v811_v34 = vmax.f32 %v779_v29, 0.0 }
 0x11f   : > { %v796_v35 = vmax.f32 %v764_v32, 0.0  ;;  %v616_v37 = vpop.f32.mrf.mxu2 }
 0x120   : > { %v730_v36 = vmul.f32 %v1348_v53, %v671_v33  ;;  %843 = vst [vmem:[%s1362_s5 + $0xe8] sm:$0xff] %v811_v34  ;;  %v706_v38 = vadd.f32 %v705_v31, %v616_v37  ;;  %v578_v39 = vpop.f32.mrf.mxu0 }
 0x121   : > { %828 = vst [vmem:[%s1362_s5 + $0x70] sm:$0xff] %v796_v35  ;;  %v668_v41 = vadd.f32 %v667_v19, %v578_v39 }
 0x122   : > { %v766_v40 = vadd.f32 %v1353_v56, %v730_v36  ;;  %v744_v42 = vmul.f32 %v1348_v53, %v706_v38 }
 0x123   : > { %v729_v61 = vmul.f32 %v1348_v53, %v668_v41 }
 0x124   : > { %v798_v43 = vmax.f32 %v766_v40, 0.0  ;;  %v780_v44 = vadd.f32 %v1353_v56, %v744_v42 }
 0x125   : > { %v672_v45 = vpop.f32.mrf.mxu1  ;;  %v765_v46 = vadd.f32 %v1353_v56, %v729_v61 }
 0x126   : > { %830 = vst [vmem:[%s1362_s5 + $0x80] sm:$0xff] %v798_v43  ;;  %v673_v47 = vadd.f32 %v672_v45, %v1369_v5  ;;  %v812_v48 = vmax.f32 %v780_v44, 0.0 }
 0x127   : > { %v797_v50 = vmax.f32 %v765_v46, 0.0  ;;  %v618_v52 = vpop.f32.mrf.mxu2 }
 0x128   : > { %v731_v51 = vmul.f32 %v1348_v53, %v673_v47  ;;  %844 = vst [vmem:[%s1362_s5 + $0xf0] sm:$0xff] %v812_v48  ;;  %v708_v54 = vadd.f32 %v707_v49, %v618_v52 }
 0x129   : > { %829 = vst [vmem:[%s1362_s5 + $0x78] sm:$0xff] %v797_v50 }
 0x12a   : > { %v767_v55 = vadd.f32 %v1353_v56, %v731_v51  ;;  %v745_v57 = vmul.f32 %v1348_v53, %v708_v54 }
 0x12c   : > { %v799_v58 = vmax.f32 %v767_v55, 0.0  ;;  %v781_v59 = vadd.f32 %v1353_v56, %v745_v57 }
 0x12e   : > { %831 = vst [vmem:[%s1362_s5 + $0x88] sm:$0xff] %v799_v58  ;;  %v813_v60 = vmax.f32 %v781_v59, 0.0 }
 0x130   : > { %845 = vst [vmem:[%s1362_s5 + $0xf8] sm:$0xff] %v813_v60 }
 0x131 PF: > { %s14_s15 = sadd.s32 1, %s1180_s15  }
 0x132   : > { %p11_p4 = scmp.ge.s32.totalorder %s14_s15, 10  }
 0x134   :  { %13 = sbr.rel (!%p11_p4) target bundleno = 1 (0x1), region = 66 }

// kernel: _lambda_.5
= control target key start
LH: loop header
LB: loop body
LE: loop exit
PB: predicated region body
PF: predicated region fallthrough
CT: control target
= control target key end

     0   :  { %s1580_s15 = smov 0   ;;  %s1925_s0 = inlined_call_operand.vmem [shape: bf16[512,288], index: 0, kind: input, shape index: {}]   ;;  %s1926_s1 = inlined_call_operand.vmem [shape: bf16[288,128], index: 1, kind: input, shape index: {}]   ;;  %s1927_s2 = inlined_call_operand.vmem [shape: f32[1,128], index: 2, kind: input, shape index: {}]   ;;  %s1928_s3 = inlined_call_operand.vmem [shape: f32[1,128], index: 3, kind: input, shape index: {}]   ;;  %s1929_s4 = inlined_call_operand.vmem [shape: f32[512,128], index: 4, kind: output, shape index: {}]  }
   0x1 LB: > { %s1161_s16 = sadd.s32 4294967295, %s1553_s15   ;;  %p1165_p0 = scmp.ge.s32.totalorder %s1553_s15, 1  ;;  %s1553_s15 = sphi %s1580_s15, %s14_s15  }
   0x2   : > { %p164_p1 = scmp.lt.s32.totalorder %s1553_s15, 3 }
   0x4   : > { %p165_p2 = pnand %p1165_p0, %p164_p1 }
   0x5   : > { %s1166_s23 = sshll.u32 (!%p165_p2), %s1161_s16, 5 }
   0x6   : > { %168 = sbr.rel (%p165_p2) target bundleno = 378 (0x17a), region = 36  ;;  %p192_p3 = scmp.lt.s32.totalorder (!%p165_p2), %s1166_s23, 63 }
   0xb   : > { %v1507_v0 = vld [vmem:[%s1926_s1 + $0x38] sm:$0xff]  ;;  %v1599_v2 = vld [vmem:[%s1926_s1 + $0x88] sm:$0xff]  ;;  %v1506_v3 = vld [vmem:[%s1926_s1 + $0x30] sm:$0xff]  ;;  %s1931_s23 = smov (!%p192_p3, %s1166_s23), 63  ;;  %vm653_vm0 = vcmask 261120  }
   0xc   : > { %v1594_v1 = vld [vmem:[%s1926_s1 + $0x78] sm:$0xff]  ;;  %702 = vmatpush.bf16.msra.mxu0 %v1507_v0  ;;  %1518 = vmatpush.bf16.msra.mxu3 %v1507_v0  ;;  %v1514_v4 = vld [vmem:[%s1926_s1 + $0x70] sm:$0xff]  ;;  %v1612_v5 = vld [vmem:[%s1926_s1 + $0x80] sm:$0xff]  ;;  %s1536_s30 = smul.u32 12, %s1931_s23  ;;  %s1169_s13 = sshll.u32 %s1931_s23, 3 }
   0xd   : > { %791 = vmatpush.bf16.msra.mxu1 %v1594_v1  ;;  %886 = vmatpush.bf16.msra.mxu2 %v1599_v2  ;;  %v1505_v6 = vld [vmem:[%s1926_s1 + $0x28] sm:$0xff]  ;;  %v1504_v11 = vld [vmem:[%s1926_s1 + $0x20] sm:$0xff]  ;;  %v1503_v13 = vld [vmem:[%s1926_s1 + $0x18] sm:$0xff]  ;;  %s1767_s17 = scalar_lea.vmem %s1929_s4, %s1169_s13 }
   0xe   : > { %v1513_v7 = vld [vmem:[%s1926_s1 + $0x68] sm:$0xff]  ;;  %s1627_s11 = scalar_lea.vmem %s1925_s0, %s1536_s30  ;;  %v1512_v12 = vld [vmem:[%s1926_s1 + $0x60] sm:$0xff]  ;;  %v1511_v14 = vld [vmem:[%s1926_s1 + $0x58] sm:$0xff] }
   0xf   : > { %v1180_v8 = vld [vmem:[%s1627_s11 + $0x8] sm:$0xf]  ;;  %v1454_v9 = vld [vmem:[%s1627_s11 + $0x10] sm:$0xf0]  ;;  %v1192_v17 = vld [vmem:[%s1627_s11 + $0x20] sm:$0xf] }
  0x10   : > { %703 = vmatpush.bf16.msra.mxu0 %v1506_v3  ;;  %1519 = vmatpush.bf16.msra.mxu3 %v1506_v3  ;;  %v1181_v10 = vor.u32 %v1454_v9, %v1180_v8  ;;  %v1502_v15 = vld [vmem:[%s1926_s1 + $0x10] sm:$0xff]  ;;  %v1457_v18 = vld [vmem:[%s1627_s11 + $0x28] sm:$0xf0]  ;;  %v1500_v22 = vld [vmem:[%s1926_s1] sm:$0xff] }
  0x11   : > { %792 = vmatpush.bf16.msra.mxu1 %v1514_v4  ;;  %887 = vmatpush.bf16.msra.mxu2 %v1612_v5  ;;  %v1510_v16 = vld [vmem:[%s1926_s1 + $0x50] sm:$0xff]  ;;  %v1501_v19 = vld [vmem:[%s1926_s1 + $0x8] sm:$0xff]  ;;  %v1193_v21 = vor.u32 %v1457_v18, %v1192_v17  ;;  %v1172_v23 = vld [vmem:[%s1627_s11] sm:$0xf] }
  0x12   : > { %v1509_v20 = vld [vmem:[%s1926_s1 + $0x48] sm:$0xff]  ;;  %v1316_v25 = vld [vmem:[%s1627_s11 + $0x120] sm:$0xf]  ;;  %v1452_v28 = vld [vmem:[%s1627_s11 + $0x4] sm:$0xf] }
  0x13   : > { %v1453_v24 = vld [vmem:[%s1627_s11 + $0x8] sm:$0xf0]  ;;  %v1508_v27 = vld [vmem:[%s1926_s1 + $0x40] sm:$0xff]  ;;  %v1174_v29 = vld [vmem:[%s1627_s11 + $0xc] sm:$0xf0] }
  0x14   : > { %704 = vmatpush.bf16.msra.mxu0 %v1505_v6  ;;  %1520 = vmatpush.bf16.msra.mxu3 %v1505_v6  ;;  %v1489_v26 = vld [vmem:[%s1627_s11 + $0x128] sm:$0xf0]  ;;  %v1173_v30 = vor.u32 %v1453_v24, %v1172_v23  ;;  %v1177_v32 = vor.u32 %v1452_v28, %v1174_v29  ;;  %v1204_v33 = vld [vmem:[%s1627_s11 + $0x38] sm:$0xf]  ;;  %v1460_v34 = vld [vmem:[%s1627_s11 + $0x40] sm:$0xf0] }
  0x15   : > { %793 = vmatpush.bf16.msra.mxu1 %v1513_v7  ;;  %1434 = vmatmul.msk.bf16.vlgmr.msra.gmra.mxu2 %vm653_vm0, %v1181_v10  ;;  %v1317_v31 = vor.u32 %v1489_v26, %v1316_v25  ;;  %v1205_v35 = vor.u32 %v1460_v34, %v1204_v33  ;;  %v1184_v36 = vld [vmem:[%s1627_s11 + $0x18] sm:$0xf]  ;;  %v1456_v37 = vld [vmem:[%s1627_s11 + $0x20] sm:$0xf0]  ;;  %v1455_v40 = vld [vmem:[%s1627_s11 + $0x1c] sm:$0xf] }
  0x16   : > { %v1328_v38 = vld [vmem:[%s1627_s11 + $0x138] sm:$0xf]  ;;  %v1492_v39 = vld [vmem:[%s1627_s11 + $0x140] sm:$0xf0]  ;;  %v1186_v41 = vld [vmem:[%s1627_s11 + $0x24] sm:$0xf0]  ;;  %v1185_v42 = vor.u32 %v1456_v37, %v1184_v36 }
  0x17   : > { %v1329_v43 = vor.u32 %v1492_v39, %v1328_v38  ;;  %v1189_v44 = vor.u32 %v1455_v40, %v1186_v41  ;;  %v1216_v45 = vld [vmem:[%s1627_s11 + $0x50] sm:$0xf]  ;;  %v1463_v46 = vld [vmem:[%s1627_s11 + $0x58] sm:$0xf0]  ;;  %v1458_v52 = vld [vmem:[%s1627_s11 + $0x34] sm:$0xf] }
  0x18   : > { %705 = vmatpush.bf16.msra.mxu0 %v1504_v11  ;;  %1521 = vmatpush.bf16.msra.mxu3 %v1504_v11  ;;  %v1217_v47 = vor.u32 %v1463_v46, %v1216_v45  ;;  %v1196_v48 = vld [vmem:[%s1627_s11 + $0x30] sm:$0xf]  ;;  %v1459_v49 = vld [vmem:[%s1627_s11 + $0x38] sm:$0xf0]  ;;  %v1198_v53 = vld [vmem:[%s1627_s11 + $0x3c] sm:$0xf0] }
  0x19   : > { %794 = vmatpush.bf16.msra.mxu1 %v1512_v12  ;;  %v1340_v50 = vld [vmem:[%s1627_s11 + $0x150] sm:$0xf]  ;;  %v1495_v51 = vld [vmem:[%s1627_s11 + $0x158] sm:$0xf0]  ;;  %v1197_v54 = vor.u32 %v1459_v49, %v1196_v48  ;;  %v1201_v56 = vor.u32 %v1458_v52, %v1198_v53  ;;  %v1228_v57 = vld [vmem:[%s1627_s11 + $0x68] sm:$0xf] }
  0x1a   : > { %v1341_v55 = vor.u32 %v1495_v51, %v1340_v50  ;;  %v1466_v58 = vld [vmem:[%s1627_s11 + $0x70] sm:$0xf0]  ;;  %v1208_v60 = vld [vmem:[%s1627_s11 + $0x48] sm:$0xf]  ;;  %v1461_v0 = vld [vmem:[%s1627_s11 + $0x4c] sm:$0xf] }
  0x1b   : > { %v1229_v59 = vor.u32 %v1466_v58, %v1228_v57  ;;  %v1462_v61 = vld [vmem:[%s1627_s11 + $0x50] sm:$0xf0]  ;;  %v1352_v62 = vld [vmem:[%s1627_s11 + $0x168] sm:$0xf]  ;;  %v1469_v6 = vld [vmem:[%s1627_s11 + $0x88] sm:$0xf0] }
  0x1c   : > { %706 = vmatpush.bf16.msra.mxu0 %v1503_v13  ;;  %1522 = vmatpush.bf16.msra.mxu3 %v1503_v13  ;;  %v1498_v63 = vld [vmem:[%s1627_s11 + $0x170] sm:$0xf0]  ;;  %v1220_v8 = vld [vmem:[%s1627_s11 + $0x60] sm:$0xf]  ;;  %v1465_v9 = vld [vmem:[%s1627_s11 + $0x68] sm:$0xf0] }
  0x1d   : > { %795 = vmatpush.bf16.msra.mxu1 %v1511_v14  ;;  %v1353_v3 = vor.u32 %v1498_v63, %v1352_v62  ;;  %v1488_v10 = vld [vmem:[%s1627_s11 + $0x124] sm:$0xf]  ;;  %v1318_v11 = vld [vmem:[%s1627_s11 + $0x12c] sm:$0xf0]  ;;  %v1252_v17 = vld [vmem:[%s1627_s11 + $0x98] sm:$0xf] }
  0x1e   : > { %v1222_v13 = vld [vmem:[%s1627_s11 + $0x6c] sm:$0xf0]  ;;  %v1472_v18 = vld [vmem:[%s1627_s11 + $0xa0] sm:$0xf0]  ;;  %v1330_v23 = vld [vmem:[%s1627_s11 + $0x144] sm:$0xf0] }
  0x1f   : > { %v1467_v24 = vld [vmem:[%s1627_s11 + $0x7c] sm:$0xf]  ;;  %v1234_v25 = vld [vmem:[%s1627_s11 + $0x84] sm:$0xf0]  ;;  %v1264_v29 = vld [vmem:[%s1627_s11 + $0xb0] sm:$0xf] }
  0x20   : > { %707 = vmatpush.bf16.msra.mxu0 %v1502_v15  ;;  %1523 = vmatpush.bf16.msra.mxu3 %v1502_v15  ;;  %v1321_v15 = vor.u32 %v1488_v10, %v1318_v11  ;;  %v1237_v28 = vor.u32 %v1467_v24, %v1234_v25  ;;  %v1471_v33 = vld [vmem:[%s1627_s11 + $0x98] sm:$0xf0]  ;;  %v1494_v34 = vld [vmem:[%s1627_s11 + $0x154] sm:$0xf]  ;;  %v1246_v37 = vld [vmem:[%s1627_s11 + $0x9c] sm:$0xf0] }
  0x21   : > { %796 = vmatpush.bf16.msra.mxu1 %v1510_v16  ;;  %v1470_v36 = vld [vmem:[%s1627_s11 + $0x94] sm:$0xf]  ;;  %v1276_v41 = vld [vmem:[%s1627_s11 + $0xc8] sm:$0xf]  ;;  %v1497_v46 = vld [vmem:[%s1627_s11 + $0x16c] sm:$0xf] }
  0x22   : > { %v1249_v40 = vor.u32 %v1470_v36, %v1246_v37  ;;  %v1474_v45 = vld [vmem:[%s1627_s11 + $0xb0] sm:$0xf0]  ;;  %v1473_v48 = vld [vmem:[%s1627_s11 + $0xac] sm:$0xf]  ;;  %v1258_v49 = vld [vmem:[%s1627_s11 + $0xb4] sm:$0xf0] }
  0x23   : > { %v1261_v53 = vor.u32 %v1473_v48, %v1258_v49  ;;  %v1268_v58 = vld [vmem:[%s1627_s11 + $0xc0] sm:$0xf]  ;;  %v1476_v62 = vld [vmem:[%s1627_s11 + $0xc4] sm:$0xf]  ;;  %v1270_v63 = vld [vmem:[%s1627_s11 + $0xcc] sm:$0xf0] }
  0x24   : > { %708 = vmatpush.bf16.msra.mxu0 %v1501_v19  ;;  %1524 = vmatpush.bf16.msra.mxu3 %v1501_v19  ;;  %v1253_v19 = vor.u32 %v1472_v18, %v1252_v17  ;;  %v1360_v24 = vld [vmem:[%s1627_s11 + $0x170] sm:$0xf]  ;;  %v1499_v25 = vld [vmem:[%s1627_s11 + $0x178] sm:$0xf0] }
  0x25   : > { %797 = vmatpush.bf16.msra.mxu1 %v1509_v20  ;;  %1435 = vmatmul.msk.bf16.gmra.mxu2 %vm653_vm0, %v1193_v21  ;;  %v1468_v21 = vld [vmem:[%s1627_s11 + $0x80] sm:$0xf0] }
  0x28   : > { %709 = vmatpush.bf16.msra.mxu0 %v1500_v22  ;;  %1525 = vmatpush.bf16.msra.mxu3 %v1500_v22  ;;  %v1491_v22 = vld [vmem:[%s1627_s11 + $0x13c] sm:$0xf] }
  0x29   : > { %798 = vmatpush.bf16.msra.mxu1 %v1508_v27 }
  0x2b   : > { %710 = vmatmul.bf16.vlgmr.msra.gmra.mxu0 %v1173_v30  ;;  %770 = vmatmul.bf16.vlgmr.msra.gmra.mxu3 %v1317_v31  ;;  %v1475_v30 = vld [vmem:[%s1627_s11 + $0xb8] sm:$0xf0] }
  0x2c   : > { %1526 = vmatpush.bf16.msrb.mxu3 %v1594_v1  ;;  %799 = vmatmul.bf16.vlgmr.msra.gmra.mxu1 %v1177_v32  ;;  %v1210_v1 = vld [vmem:[%s1627_s11 + $0x54] sm:$0xf0]  ;;  %v1265_v31 = vor.u32 %v1475_v30, %v1264_v29  ;;  %v1244_v32 = vld [vmem:[%s1627_s11 + $0x90] sm:$0xf] }
  0x2d   : > { %v1245_v38 = vor.u32 %v1471_v33, %v1244_v32 }
  0x30   : > { %1527 = vmatpush.bf16.msrb.mxu3 %v1514_v4  ;;  %v1213_v4 = vor.u32 %v1461_v0, %v1210_v1 }
  0x34   : > { %1528 = vmatpush.bf16.msrb.mxu3 %v1513_v7 }
  0x35   : > { %1436 = vmatmul.msk.bf16.gmra.mxu2 %vm653_vm0, %v1205_v35  ;;  %v1342_v35 = vld [vmem:[%s1627_s11 + $0x15c] sm:$0xf0] }
  0x36   : > { %v1345_v39 = vor.u32 %v1494_v34, %v1342_v35 }
  0x38   : > { %1529 = vmatpush.bf16.msrb.mxu3 %v1512_v12  ;;  %v1464_v12 = vld [vmem:[%s1627_s11 + $0x64] sm:$0xf] }
  0x3b   : > { %715 = vmatmul.bf16.gmra.mxu0 %v1185_v42  ;;  %775 = vmatmul.bf16.gmra.mxu3 %v1329_v43  ;;  %v1478_v42 = vld [vmem:[%s1627_s11 + $0xd0] sm:$0xf0] }
  0x3c   : > { %1530 = vmatpush.bf16.msrb.mxu3 %v1511_v14  ;;  %804 = vmatmul.bf16.gmra.mxu1 %v1189_v44  ;;  %v1221_v14 = vor.u32 %v1465_v9, %v1220_v8  ;;  %v1277_v43 = vor.u32 %v1478_v42, %v1276_v41  ;;  %v1256_v44 = vld [vmem:[%s1627_s11 + $0xa8] sm:$0xf]  ;;  %v1755_v9 = vld [vmem:[%s1928_s3] ss:$0 sm:$0xff]  ;;  %v1312_v42 = vld [vmem:[%s1627_s11 + $0x110] sm:$0xf] }
  0x3d   : > { %v1257_v50 = vor.u32 %v1474_v45, %v1256_v44 }
  0x40   : > { %1531 = vmatpush.bf16.msrb.mxu3 %v1510_v16  ;;  %v1225_v16 = vor.u32 %v1464_v12, %v1222_v13  ;;  %v1300_v12 = vld [vmem:[%s1627_s11 + $0xf8] sm:$0xf]  ;;  %v1484_v13 = vld [vmem:[%s1627_s11 + $0x100] sm:$0xf0] }
  0x41   : > { %v1301_v18 = vor.u32 %v1484_v13, %v1300_v12 }
  0x44   : > { %1532 = vmatpush.bf16.msrb.mxu3 %v1509_v20  ;;  %v1232_v20 = vld [vmem:[%s1627_s11 + $0x78] sm:$0xf] }
  0x45   : > { %1437 = vmatmul.msk.bf16.gmra.mxu2 %vm653_vm0, %v1217_v47  ;;  %v1233_v26 = vor.u32 %v1468_v21, %v1232_v20  ;;  %v1354_v47 = vld [vmem:[%s1627_s11 + $0x174] sm:$0xf0] }
  0x46   : > { %v1357_v51 = vor.u32 %v1497_v46, %v1354_v47  ;;  %v1280_v21 = vld [vmem:[%s1627_s11 + $0xd8] sm:$0xf] }
  0x48   : > { %1533 = vmatpush.bf16.msrb.mxu3 %v1508_v27  ;;  %v1333_v27 = vor.u32 %v1491_v22, %v1330_v23  ;;  %v1480_v23 = vld [vmem:[%s1627_s11 + $0xe0] sm:$0xf0] }
  0x49   : > { %v1281_v30 = vor.u32 %v1480_v23, %v1280_v21  ;;  %v1306_v21 = vld [vmem:[%s1627_s11 + $0x114] sm:$0xf0] }
  0x4b   : > { %720 = vmatmul.bf16.gmra.mxu0 %v1197_v54  ;;  %780 = vmatmul.bf16.gmra.mxu3 %v1341_v55  ;;  %v1288_v54 = vld [vmem:[%s1627_s11 + $0xe0] sm:$0xf]  ;;  %v1481_v55 = vld [vmem:[%s1627_s11 + $0xe8] sm:$0xf0] }
  0x4c   : > { %1534 = vmatpush.bf16.msra.mxu3 %v1599_v2  ;;  %809 = vmatmul.bf16.gmra.mxu1 %v1201_v56  ;;  %v1209_v2 = vor.u32 %v1462_v61, %v1208_v60  ;;  %v1289_v57 = vor.u32 %v1481_v55, %v1288_v54  ;;  %v1348_v60 = vld [vmem:[%s1627_s11 + $0x158] sm:$0xf]  ;;  %v1496_v61 = vld [vmem:[%s1627_s11 + $0x160] sm:$0xf0]  ;;  %v1482_v54 = vld [vmem:[%s1627_s11 + $0xf4] sm:$0xf] }
  0x4d   : > { %v1349_v1 = vor.u32 %v1496_v61, %v1348_v60  ;;  %v1294_v55 = vld [vmem:[%s1627_s11 + $0xfc] sm:$0xf0] }
  0x50   : > { %1535 = vmatpush.bf16.msra.mxu3 %v1612_v5  ;;  %v1240_v5 = vld [vmem:[%s1627_s11 + $0x80] sm:$0xf] }
  0x51   : > { %v1241_v7 = vor.u32 %v1469_v6, %v1240_v5 }
  0x55   : > { %1438 = vmatmul.msk.bf16.gmra.mxu2 %vm653_vm0, %v1229_v59  ;;  %v1477_v59 = vld [vmem:[%s1627_s11 + $0xc8] sm:$0xf0] }
  0x56   : > { %v1269_v0 = vor.u32 %v1477_v59, %v1268_v58 }
  0x5b   : > { %725 = vmatmul.bf16.gmra.mxu0 %v1209_v2  ;;  %785 = vmatmul.bf16.gmra.mxu3 %v1353_v3 }
  0x5c   : > { %814 = vmatmul.bf16.gmra.mxu1 %v1213_v4  ;;  %v1273_v4 = vor.u32 %v1476_v62, %v1270_v63  ;;  %v1297_v62 = vor.u32 %v1482_v54, %v1294_v55 }
  0x65   : > { %1439 = vmatmul.msk.bf16.gmra.mxu2 %vm653_vm0, %v1241_v7  ;;  %v1749_v7 = vld [vmem:[%s1927_s2] ss:$0 sm:$0xff] }
  0x6b   : > { %730 = vmatmul.bf16.gmra.mxu0 %v1221_v14  ;;  %859 = vmatmul.bf16.vlgmr.msrb.gmra.mxu3 %v1321_v15 }
  0x6c   : > { %819 = vmatmul.bf16.gmra.mxu1 %v1225_v16 }
  0x75   : > { %1440 = vmatmul.msk.bf16.gmra.mxu2 %vm653_vm0, %v1253_v19 }
  0x7b   : > { %735 = vmatmul.bf16.gmra.mxu0 %v1233_v26  ;;  %864 = vmatmul.bf16.gmra.mxu3 %v1333_v27  ;;  %v1479_v26 = vld [vmem:[%s1627_s11 + $0xdc] sm:$0xf]  ;;  %v1282_v27 = vld [vmem:[%s1627_s11 + $0xe4] sm:$0xf0] }
  0x7c   : > { %824 = vmatmul.bf16.gmra.mxu1 %v1237_v28  ;;  %v1285_v35 = vor.u32 %v1479_v26, %v1282_v27 }
  0x85   : > { %1441 = vmatmul.msk.bf16.gmra.mxu2 %vm653_vm0, %v1265_v31  ;;  %v1361_v31 = vor.u32 %v1499_v25, %v1360_v24 }
  0x8b   : > { %740 = vmatmul.bf16.gmra.mxu0 %v1245_v38  ;;  %869 = vmatmul.bf16.gmra.mxu3 %v1345_v39 }
  0x8c   : > { %829 = vmatmul.bf16.gmra.mxu1 %v1249_v40 }
  0x95   : > { %1442 = vmatmul.msk.bf16.gmra.mxu2 %vm653_vm0, %v1277_v43  ;;  %v1487_v43 = vld [vmem:[%s1627_s11 + $0x118] sm:$0xf0] }
  0x96   : > { %v1313_v48 = vor.u32 %v1487_v43, %v1312_v42 }
  0x98   : > { %v889_v52 = vpop.f32.mrf.mxu2 }
  0x9b   : > { %745 = vmatmul.bf16.gmra.mxu0 %v1257_v50  ;;  %874 = vmatmul.bf16.gmra.mxu3 %v1357_v51 }
  0x9c   : > { %834 = vmatmul.bf16.gmra.mxu1 %v1261_v53  ;;  %v1483_v53 = vld [vmem:[%s1627_s11 + $0xf8] sm:$0xf0] }
  0xa0   : > { %v891_v56 = vpop.f32.mrf.mxu2 }
  0xa5   : > { %1443 = vmatmul.msk.bf16.gmra.mxu2 %vm653_vm0, %v1289_v57 }
  0xa8   : > { %v894_v2 = vpop.f32.mrf.mxu2  ;;  %v711_v3 = vpop.f32.mrf.mxu0 }
  0xa9   : > { %v800_v5 = vpop.f32.mrf.mxu1 }
  0xaa   : > { %v801_v6 = vadd.f32 %v800_v5, %v711_v3  ;;  %v1324_v5 = vld [vmem:[%s1627_s11 + $0x128] sm:$0xf] }
  0xab   : > { %750 = vmatmul.bf16.gmra.mxu0 %v1269_v0  ;;  %1448 = vmatmul.msk.bf16.vlgmr.msra.gmra.mxu3 %vm653_vm0, %v1349_v1 }
  0xac   : > { %v890_v8 = vadd.f32 %v889_v52, %v801_v6  ;;  %839 = vmatmul.bf16.gmra.mxu1 %v1273_v4  ;;  %v1292_v52 = vld [vmem:[%s1627_s11 + $0xf0] sm:$0xf]  ;;  %v1490_v6 = vld [vmem:[%s1627_s11 + $0x130] sm:$0xf0] }
  0xad   : > { %v1293_v58 = vor.u32 %v1483_v53, %v1292_v52 }
  0xae   : > { %v973_v10 = vmul.f32 %v1749_v7, %v890_v8  ;;  %v1759_v11 = vpop.f32.mrf.mxu3 }
  0xb0   : > { %v1009_v14 = vadd.f32 %v1755_v9, %v973_v10  ;;  %v896_v15 = vpop.f32.mrf.mxu2  ;;  %v713_v16 = vpop.f32.mrf.mxu0 }
  0xb1   : > { %v802_v17 = vpop.f32.mrf.mxu1 }
  0xb2   : > { %v1041_v19 = vmax.f32 %v1009_v14, 0.0  ;;  %v803_v20 = vadd.f32 %v802_v17, %v713_v16  ;;  %v1325_v14 = vor.u32 %v1490_v6, %v1324_v5 }
  0xb4   : > { %1073 = vst [vmem:[%s1767_s17] sm:$0xff] %v1041_v19  ;;  %v892_v22 = vadd.f32 %v891_v56, %v803_v20  ;;  %v1486_v19 = vld [vmem:[%s1627_s11 + $0x110] sm:$0xf0]  ;;  %v1485_v20 = vld [vmem:[%s1627_s11 + $0x10c] sm:$0xf] }
  0xb5   : > { %1444 = vmatmul.msk.bf16.gmra.mxu2 %vm653_vm0, %v1301_v18  ;;  %v1304_v18 = vld [vmem:[%s1627_s11 + $0x108] sm:$0xf] }
  0xb6   : > { %v974_v28 = vmul.f32 %v1749_v7, %v892_v22  ;;  %v1778_v29 = vpop.f32.mrf.mxu3  ;;  %v1305_v24 = vor.u32 %v1486_v19, %v1304_v18 }
  0xb8   : > { %v1010_v32 = vadd.f32 %v1755_v9, %v974_v28  ;;  %v899_v33 = vpop.f32.mrf.mxu2  ;;  %v716_v34 = vpop.f32.mrf.mxu0  ;;  %v1309_v28 = vor.u32 %v1485_v20, %v1306_v21 }
  0xb9   : > { %v805_v36 = vpop.f32.mrf.mxu1 }
  0xba   : > { %v1042_v37 = vmax.f32 %v1010_v32, 0.0  ;;  %v806_v38 = vadd.f32 %v805_v36, %v716_v34  ;;  %v1336_v36 = vld [vmem:[%s1627_s11 + $0x140] sm:$0xf] }
  0xbb   : > { %755 = vmatmul.bf16.gmra.mxu0 %v1281_v30  ;;  %1449 = vmatmul.msk.bf16.gmra.mxu3 %vm653_vm0, %v1361_v31 }
  0xbc   : > { %1074 = vst [vmem:[%s1767_s17 + $0x8] sm:$0xff] %v1042_v37  ;;  %v895_v39 = vadd.f32 %v894_v2, %v806_v38  ;;  %844 = vmatmul.bf16.gmra.mxu1 %v1285_v35  ;;  %v1493_v37 = vld [vmem:[%s1627_s11 + $0x148] sm:$0xf0] }
  0xbd   : > { %v1337_v43 = vor.u32 %v1493_v37, %v1336_v36 }
  0xbe   : > { %v975_v40 = vmul.f32 %v1749_v7, %v895_v39  ;;  %v1784_v41 = vpop.f32.mrf.mxu3 }
  0xc0   : > { %v1011_v44 = vadd.f32 %v1755_v9, %v975_v40  ;;  %v901_v45 = vpop.f32.mrf.mxu2  ;;  %v718_v46 = vpop.f32.mrf.mxu0 }
  0xc1   : > { %v807_v47 = vpop.f32.mrf.mxu1 }
  0xc2   : > { %v1043_v49 = vmax.f32 %v1011_v44, 0.0  ;;  %v808_v50 = vadd.f32 %v807_v47, %v718_v46 }
  0xc4   : > { %1075 = vst [vmem:[%s1767_s17 + $0x10] sm:$0xff] %v1043_v49  ;;  %v897_v51 = vadd.f32 %v896_v15, %v808_v50 }
  0xc5   : > { %1445 = vmatmul.msk.bf16.gmra.mxu2 %vm653_vm0, %v1313_v48 }
  0xc6   : > { %v976_v56 = vmul.f32 %v1749_v7, %v897_v51  ;;  %v1796_v57 = vpop.f32.mrf.mxu3 }
  0xc8   : > { %v1012_v59 = vadd.f32 %v1755_v9, %v976_v56  ;;  %v904_v60 = vpop.f32.mrf.mxu2  ;;  %v721_v61 = vpop.f32.mrf.mxu0 }
  0xc9   : > { %v810_v63 = vpop.f32.mrf.mxu1 }
  0xca   : > { %v1044_v0 = vmax.f32 %v1012_v59, 0.0  ;;  %v811_v1 = vadd.f32 %v810_v63, %v721_v61 }
  0xcb   : > { %760 = vmatmul.bf16.gmra.mxu0 %v1293_v58 }
  0xcc   : > { %1076 = vst [vmem:[%s1767_s17 + $0x18] sm:$0xff] %v1044_v0  ;;  %v900_v2 = vadd.f32 %v899_v33, %v811_v1  ;;  %849 = vmatmul.bf16.gmra.mxu1 %v1297_v62 }
  0xce   : > { %v977_v3 = vmul.f32 %v1749_v7, %v900_v2  ;;  %v1801_v4 = vpop.f32.mrf.mxu3 }
  0xd0   : > { %v1013_v8 = vadd.f32 %v1755_v9, %v977_v3  ;;  %v906_v10 = vpop.f32.mrf.mxu2  ;;  %v723_v12 = vpop.f32.mrf.mxu0 }
  0xd1   : > { %v812_v13 = vpop.f32.mrf.mxu1 }
  0xd2   : > { %v1045_v15 = vmax.f32 %v1013_v8, 0.0  ;;  %v813_v16 = vadd.f32 %v812_v13, %v723_v12 }
  0xd4   : > { %1077 = vst [vmem:[%s1767_s17 + $0x20] sm:$0xff] %v1045_v15  ;;  %v902_v17 = vadd.f32 %v901_v45, %v813_v16 }
  0xd5   : > { %1446 = vmatmul.msk.bf16.gmra.mxu2 %vm653_vm0, %v1325_v14 }
  0xd6   : > { %v978_v22 = vmul.f32 %v1749_v7, %v902_v17  ;;  %v1813_v23 = vpop.f32.mrf.mxu3 }
  0xd8   : > { %v1014_v25 = vadd.f32 %v1755_v9, %v978_v22  ;;  %v909_v26 = vpop.f32.mrf.mxu2  ;;  %v726_v27 = vpop.f32.mrf.mxu0 }
  0xd9   : > { %v815_v30 = vpop.f32.mrf.mxu1 }
  0xda   : > { %v1046_v31 = vmax.f32 %v1014_v25, 0.0  ;;  %v816_v32 = vadd.f32 %v815_v30, %v726_v27 }
  0xdb   : > { %765 = vmatmul.bf16.gmra.mxu0 %v1305_v24 }
  0xdc   : > { %1078 = vst [vmem:[%s1767_s17 + $0x28] sm:$0xff] %v1046_v31  ;;  %v905_v33 = vadd.f32 %v904_v60, %v816_v32  ;;  %854 = vmatmul.bf16.gmra.mxu1 %v1309_v28 }
  0xde   : > { %v979_v34 = vmul.f32 %v1749_v7, %v905_v33  ;;  %v1818_v35 = vpop.f32.mrf.mxu3 }
  0xe0   : > { %v1015_v38 = vadd.f32 %v1755_v9, %v979_v34  ;;  %v911_v39 = vpop.f32.mrf.mxu2  ;;  %v728_v40 = vpop.f32.mrf.mxu0 }
  0xe1   : > { %v817_v42 = vpop.f32.mrf.mxu1 }
  0xe2   : > { %v1047_v44 = vmax.f32 %v1015_v38, 0.0  ;;  %v818_v45 = vadd.f32 %v817_v42, %v728_v40 }
  0xe4   : > { %1079 = vst [vmem:[%s1767_s17 + $0x30] sm:$0xff] %v1047_v44  ;;  %v907_v46 = vadd.f32 %v906_v10, %v818_v45 }
  0xe5   : > { %1447 = vmatmul.msk.bf16.gmra.mxu2 %vm653_vm0, %v1337_v43 }
  0xe6   : > { %v980_v47 = vmul.f32 %v1749_v7, %v907_v46  ;;  %v1826_v48 = vpop.f32.mrf.mxu3 }
  0xe8   : > { %v1016_v49 = vadd.f32 %v1755_v9, %v980_v47  ;;  %v914_v50 = vpop.f32.mrf.mxu2  ;;  %v731_v51 = vpop.f32.mrf.mxu0 }
  0xe9   : > { %v820_v52 = vpop.f32.mrf.mxu1 }
  0xea   : > { %v1048_v53 = vmax.f32 %v1016_v49, 0.0  ;;  %v821_v54 = vadd.f32 %v820_v52, %v731_v51 }
  0xec   : > { %1080 = vst [vmem:[%s1767_s17 + $0x38] sm:$0xff] %v1048_v53  ;;  %v910_v55 = vadd.f32 %v909_v26, %v821_v54 }
  0xee   : > { %v981_v56 = vmul.f32 %v1749_v7, %v910_v55  ;;  %v860_v58 = vpop.f32.mrf.mxu3 }
  0xef   : > { %v1832_v59 = vadd.f32 %v860_v58, %v1759_v11 }
  0xf0   : > { %v1017_v60 = vadd.f32 %v1755_v9, %v981_v56  ;;  %v916_v61 = vpop.f32.mrf.mxu2  ;;  %v733_v62 = vpop.f32.mrf.mxu0 }
  0xf1   : > { %v822_v63 = vpop.f32.mrf.mxu1 }
  0xf2   : > { %v1049_v0 = vmax.f32 %v1017_v60, 0.0  ;;  %v823_v1 = vadd.f32 %v822_v63, %v733_v62 }
  0xf4   : > { %1081 = vst [vmem:[%s1767_s17 + $0x40] sm:$0xff] %v1049_v0  ;;  %v912_v2 = vadd.f32 %v911_v39, %v823_v1 }
  0xf6   : > { %v982_v3 = vmul.f32 %v1749_v7, %v912_v2  ;;  %v862_v5 = vpop.f32.mrf.mxu3 }
  0xf7   : > { %v1838_v6 = vadd.f32 %v862_v5, %v1778_v29 }
  0xf8   : > { %v1018_v8 = vadd.f32 %v1755_v9, %v982_v3  ;;  %v919_v11 = vpop.f32.mrf.mxu2  ;;  %v736_v10 = vpop.f32.mrf.mxu0 }
  0xf9   : > { %v825_v12 = vpop.f32.mrf.mxu1 }
  0xfa   : > { %v1050_v13 = vmax.f32 %v1018_v8, 0.0  ;;  %v826_v14 = vadd.f32 %v825_v12, %v736_v10 }
  0xfc   : > { %1082 = vst [vmem:[%s1767_s17 + $0x48] sm:$0xff] %v1050_v13  ;;  %v915_v15 = vadd.f32 %v914_v50, %v826_v14 }
  0xfe   : > { %v983_v16 = vmul.f32 %v1749_v7, %v915_v15  ;;  %v865_v17 = vpop.f32.mrf.mxu3 }
  0xff   : > { %v1844_v18 = vadd.f32 %v865_v17, %v1784_v41 }
 0x100   : > { %v1019_v19 = vadd.f32 %v1755_v9, %v983_v16  ;;  %v921_v29 = vpop.f32.mrf.mxu2  ;;  %v738_v20 = vpop.f32.mrf.mxu0 }
 0x101   : > { %v827_v21 = vpop.f32.mrf.mxu1 }
 0x102   : > { %v1051_v22 = vmax.f32 %v1019_v19, 0.0  ;;  %v828_v24 = vadd.f32 %v827_v21, %v738_v20 }
 0x104   : > { %1083 = vst [vmem:[%s1767_s17 + $0x50] sm:$0xff] %v1051_v22  ;;  %v917_v25 = vadd.f32 %v916_v61, %v828_v24 }
 0x106   : > { %v984_v26 = vmul.f32 %v1749_v7, %v917_v25  ;;  %v867_v27 = vpop.f32.mrf.mxu3 }
 0x107   : > { %v1850_v28 = vadd.f32 %v867_v27, %v1796_v57 }
 0x108   : > { %v1020_v30 = vadd.f32 %v1755_v9, %v984_v26  ;;  %v924_v41 = vpop.f32.mrf.mxu2  ;;  %v741_v31 = vpop.f32.mrf.mxu0 }
 0x109   : > { %v830_v32 = vpop.f32.mrf.mxu1 }
 0x10a   : > { %v1052_v33 = vmax.f32 %v1020_v30, 0.0  ;;  %v831_v34 = vadd.f32 %v830_v32, %v741_v31 }
 0x10c   : > { %1084 = vst [vmem:[%s1767_s17 + $0x58] sm:$0xff] %v1052_v33  ;;  %v920_v36 = vadd.f32 %v919_v11, %v831_v34 }
 0x10e   : > { %v985_v37 = vmul.f32 %v1749_v7, %v920_v36  ;;  %v870_v38 = vpop.f32.mrf.mxu3 }
 0x10f   : > { %v871_v16 = vadd.f32 %v870_v38, %v1801_v4 }
 0x110   : > { %v1021_v39 = vadd.f32 %v1755_v9, %v985_v37  ;;  %v926_v40 = vpop.f32.mrf.mxu2  ;;  %v743_v42 = vpop.f32.mrf.mxu0 }
 0x111   : > { %v832_v57 = vpop.f32.mrf.mxu1 }
 0x112   : > { %v1053_v43 = vmax.f32 %v1021_v39, 0.0  ;;  %v833_v44 = vadd.f32 %v832_v57, %v743_v42 }
 0x114   : > { %1085 = vst [vmem:[%s1767_s17 + $0x60] sm:$0xff] %v1053_v43  ;;  %v922_v45 = vadd.f32 %v921_v29, %v833_v44 }
 0x116   : > { %v986_v46 = vmul.f32 %v1749_v7, %v922_v45  ;;  %v872_v47 = vpop.f32.mrf.mxu3 }
 0x117   : > { %v873_v4 = vadd.f32 %v872_v47, %v1813_v23 }
 0x118   : > { %v1022_v49 = vadd.f32 %v1755_v9, %v986_v46  ;;  %v929_v50 = vpop.f32.mrf.mxu2  ;;  %v746_v51 = vpop.f32.mrf.mxu0 }
 0x119   : > { %v835_v52 = vpop.f32.mrf.mxu1 }
 0x11a   : > { %v1054_v53 = vmax.f32 %v1022_v49, 0.0  ;;  %v836_v54 = vadd.f32 %v835_v52, %v746_v51 }
 0x11c   : > { %1086 = vst [vmem:[%s1767_s17 + $0x68] sm:$0xff] %v1054_v53  ;;  %v925_v55 = vadd.f32 %v924_v41, %v836_v54 }
 0x11e   : > { %v987_v56 = vmul.f32 %v1749_v7, %v925_v55  ;;  %v875_v58 = vpop.f32.mrf.mxu3 }
 0x11f   : > { %v876_v44 = vadd.f32 %v875_v58, %v1818_v35 }
 0x120   : > { %v1023_v60 = vadd.f32 %v1755_v9, %v987_v56  ;;  %v931_v61 = vpop.f32.mrf.mxu2  ;;  %v748_v62 = vpop.f32.mrf.mxu0 }
 0x121   : > { %v837_v63 = vpop.f32.mrf.mxu1 }
 0x122   : > { %v1055_v0 = vmax.f32 %v1023_v60, 0.0  ;;  %v838_v1 = vadd.f32 %v837_v63, %v748_v62 }
 0x124   : > { %1087 = vst [vmem:[%s1767_s17 + $0x70] sm:$0xff] %v1055_v0  ;;  %v927_v2 = vadd.f32 %v926_v40, %v838_v1 }
 0x126   : > { %v988_v3 = vmul.f32 %v1749_v7, %v927_v2  ;;  %v877_v5 = vpop.f32.mrf.mxu3 }
 0x127   : > { %v878_v58 = vadd.f32 %v877_v5, %v1826_v48 }
 0x128   : > { %v1024_v8 = vadd.f32 %v1755_v9, %v988_v3  ;;  %v934_v11 = vpop.f32.mrf.mxu2  ;;  %v751_v10 = vpop.f32.mrf.mxu0 }
 0x129   : > { %v840_v12 = vpop.f32.mrf.mxu1 }
 0x12a   : > { %v1056_v13 = vmax.f32 %v1024_v8, 0.0  ;;  %v841_v14 = vadd.f32 %v840_v12, %v751_v10 }
 0x12c   : > { %1088 = vst [vmem:[%s1767_s17 + $0x78] sm:$0xff] %v1056_v13  ;;  %v930_v15 = vadd.f32 %v929_v50, %v841_v14 }
 0x12e   : > { %v989_v17 = vmul.f32 %v1749_v7, %v930_v15  ;;  %v959_v19 = vpop.f32.mrf.mxu3 }
 0x12f   : > { %v960_v29 = vadd.f32 %v959_v19, %v871_v16 }
 0x130   : > { %v1025_v20 = vadd.f32 %v1755_v9, %v989_v17  ;;  %v936_v21 = vpop.f32.mrf.mxu2  ;;  %v753_v22 = vpop.f32.mrf.mxu0 }
 0x131   : > { %v1001_v24 = vmul.f32 %v1749_v7, %v960_v29  ;;  %v842_v25 = vpop.f32.mrf.mxu1 }
 0x132   : > { %v1057_v26 = vmax.f32 %v1025_v20, 0.0  ;;  %v843_v27 = vadd.f32 %v842_v25, %v753_v22 }
 0x133   : > { %v1037_v30 = vadd.f32 %v1755_v9, %v1001_v24 }
 0x134   : > { %1089 = vst [vmem:[%s1767_s17 + $0x80] sm:$0xff] %v1057_v26  ;;  %v932_v41 = vadd.f32 %v931_v61, %v843_v27 }
 0x135   : > { %v1069_v31 = vmax.f32 %v1037_v30, 0.0 }
 0x136   : > { %v990_v32 = vmul.f32 %v1749_v7, %v932_v41  ;;  %v961_v33 = vpop.f32.mrf.mxu3 }
 0x137   : > { %1101 = vst [vmem:[%s1767_s17 + $0xe0] sm:$0xff] %v1069_v31  ;;  %v962_v34 = vadd.f32 %v961_v33, %v873_v4 }
 0x138   : > { %v1026_v36 = vadd.f32 %v1755_v9, %v990_v32  ;;  %v939_v37 = vpop.f32.mrf.mxu2  ;;  %v756_v38 = vpop.f32.mrf.mxu0 }
 0x139   : > { %v1002_v39 = vmul.f32 %v1749_v7, %v962_v34  ;;  %v845_v40 = vpop.f32.mrf.mxu1 }
 0x13a   : > { %v1058_v42 = vmax.f32 %v1026_v36, 0.0  ;;  %v846_v57 = vadd.f32 %v845_v40, %v756_v38 }
 0x13b   : > { %v1038_v43 = vadd.f32 %v1755_v9, %v1002_v39 }
 0x13c   : > { %1090 = vst [vmem:[%s1767_s17 + $0x88] sm:$0xff] %v1058_v42  ;;  %v935_v23 = vadd.f32 %v934_v11, %v846_v57 }
 0x13d   : > { %v1070_v45 = vmax.f32 %v1038_v43, 0.0 }
 0x13e   : > { %v991_v46 = vmul.f32 %v1749_v7, %v935_v23  ;;  %v964_v47 = vpop.f32.mrf.mxu3 }
 0x13f   : > { %1102 = vst [vmem:[%s1767_s17 + $0xe8] sm:$0xff] %v1070_v45  ;;  %v965_v49 = vadd.f32 %v964_v47, %v876_v44 }
 0x140   : > { %v1027_v50 = vadd.f32 %v1755_v9, %v991_v46  ;;  %v941_v51 = vpop.f32.mrf.mxu2  ;;  %v758_v52 = vpop.f32.mrf.mxu0 }
 0x141   : > { %v1003_v53 = vmul.f32 %v1749_v7, %v965_v49  ;;  %v847_v54 = vpop.f32.mrf.mxu1 }
 0x142   : > { %v1059_v55 = vmax.f32 %v1027_v50, 0.0  ;;  %v848_v56 = vadd.f32 %v847_v54, %v758_v52 }
 0x143   : > { %v1039_v60 = vadd.f32 %v1755_v9, %v1003_v53 }
 0x144   : > { %1091 = vst [vmem:[%s1767_s17 + $0x90] sm:$0xff] %v1059_v55  ;;  %v937_v35 = vadd.f32 %v936_v21, %v848_v56 }
 0x145   : > { %v1071_v61 = vmax.f32 %v1039_v60, 0.0 }
 0x146   : > { %v992_v62 = vmul.f32 %v1749_v7, %v937_v35  ;;  %v966_v63 = vpop.f32.mrf.mxu3 }
 0x147   : > { %1103 = vst [vmem:[%s1767_s17 + $0xf0] sm:$0xff] %v1071_v61  ;;  %v967_v0 = vadd.f32 %v966_v63, %v878_v58 }
 0x148   : > { %v1028_v1 = vadd.f32 %v1755_v9, %v992_v62  ;;  %v944_v2 = vpop.f32.mrf.mxu2  ;;  %v761_v3 = vpop.f32.mrf.mxu0 }
 0x149   : > { %v1004_v8 = vmul.f32 %v1749_v7, %v967_v0  ;;  %v850_v11 = vpop.f32.mrf.mxu1 }
 0x14a   : > { %v1060_v10 = vmax.f32 %v1028_v1, 0.0  ;;  %v851_v12 = vadd.f32 %v850_v11, %v761_v3 }
 0x14b   : > { %v1040_v13 = vadd.f32 %v1755_v9, %v1004_v8 }
 0x14c   : > { %1092 = vst [vmem:[%s1767_s17 + $0x98] sm:$0xff] %v1060_v10  ;;  %v940_v48 = vadd.f32 %v939_v37, %v851_v12 }
 0x14d   : > { %v1072_v5 = vmax.f32 %v1040_v13, 0.0 }
 0x14e   : > { %v993_v14 = vmul.f32 %v1749_v7, %v940_v48 }
 0x14f   : > { %1104 = vst [vmem:[%s1767_s17 + $0xf8] sm:$0xff] %v1072_v5 }
 0x150   : > { %v1029_v15 = vadd.f32 %v1755_v9, %v993_v14  ;;  %v946_v16 = vpop.f32.mrf.mxu2  ;;  %v763_v17 = vpop.f32.mrf.mxu0 }
 0x151   : > { %v852_v19 = vpop.f32.mrf.mxu1 }
 0x152   : > { %v1061_v29 = vmax.f32 %v1029_v15, 0.0  ;;  %v853_v20 = vadd.f32 %v852_v19, %v763_v17 }
 0x154   : > { %1093 = vst [vmem:[%s1767_s17 + $0xa0] sm:$0xff] %v1061_v29  ;;  %v942_v21 = vadd.f32 %v941_v51, %v853_v20 }
 0x156   : > { %v994_v22 = vmul.f32 %v1749_v7, %v942_v21 }
 0x158   : > { %v1030_v24 = vadd.f32 %v1755_v9, %v994_v22  ;;  %v949_v25 = vpop.f32.mrf.mxu2  ;;  %v766_v26 = vpop.f32.mrf.mxu0 }
 0x159   : > { %v950_v27 = vadd.f32 %v949_v25, %v1832_v59  ;;  %v855_v30 = vpop.f32.mrf.mxu1 }
 0x15a   : > { %v1062_v41 = vmax.f32 %v1030_v24, 0.0  ;;  %v856_v4 = vadd.f32 %v855_v30, %v766_v26 }
 0x15b   : > { %v997_v31 = vmul.f32 %v1749_v7, %v950_v27 }
 0x15c   : > { %1094 = vst [vmem:[%s1767_s17 + $0xa8] sm:$0xff] %v1062_v41  ;;  %v945_v32 = vadd.f32 %v944_v2, %v856_v4 }
 0x15d   : > { %v1033_v33 = vadd.f32 %v1755_v9, %v997_v31 }
 0x15e   : > { %v995_v34 = vmul.f32 %v1749_v7, %v945_v32 }
 0x15f   : > { %v1065_v36 = vmax.f32 %v1033_v33, 0.0 }
 0x160   : > { %v1031_v37 = vadd.f32 %v1755_v9, %v995_v34  ;;  %v951_v38 = vpop.f32.mrf.mxu2  ;;  %v768_v39 = vpop.f32.mrf.mxu0 }
 0x161   : > { %1097 = vst [vmem:[%s1767_s17 + $0xc0] sm:$0xff] %v1065_v36  ;;  %v952_v59 = vadd.f32 %v951_v38, %v1838_v6  ;;  %v857_v40 = vpop.f32.mrf.mxu1 }
 0x162   : > { %v1063_v42 = vmax.f32 %v1031_v37, 0.0  ;;  %v858_v57 = vadd.f32 %v857_v40, %v768_v39 }
 0x163   : > { %v998_v43 = vmul.f32 %v1749_v7, %v952_v59 }
 0x164   : > { %1095 = vst [vmem:[%s1767_s17 + $0xb0] sm:$0xff] %v1063_v42  ;;  %v947_v23 = vadd.f32 %v946_v16, %v858_v57 }
 0x165   : > { %v1034_v44 = vadd.f32 %v1755_v9, %v998_v43 }
 0x166   : > { %v996_v45 = vmul.f32 %v1749_v7, %v947_v23 }
 0x167   : > { %v1066_v46 = vmax.f32 %v1034_v44, 0.0 }
 0x168   : > { %v1032_v47 = vadd.f32 %v1755_v9, %v996_v45  ;;  %v954_v49 = vpop.f32.mrf.mxu2 }
 0x169   : > { %1098 = vst [vmem:[%s1767_s17 + $0xc8] sm:$0xff] %v1066_v46  ;;  %v955_v6 = vadd.f32 %v954_v49, %v1844_v18 }
 0x16a   : > { %v1064_v50 = vmax.f32 %v1032_v47, 0.0 }
 0x16b   : > { %v999_v51 = vmul.f32 %v1749_v7, %v955_v6 }
 0x16c   : > { %1096 = vst [vmem:[%s1767_s17 + $0xb8] sm:$0xff] %v1064_v50 }
 0x16d   : > { %v1035_v52 = vadd.f32 %v1755_v9, %v999_v51 }
 0x16f   : > { %v1067_v53 = vmax.f32 %v1035_v52, 0.0 }
 0x170   : > { %v956_v54 = vpop.f32.mrf.mxu2 }
 0x171   : > { %1099 = vst [vmem:[%s1767_s17 + $0xd0] sm:$0xff] %v1067_v53  ;;  %v957_v55 = vadd.f32 %v956_v54, %v1850_v28 }
 0x173   : > { %v1000_v56 = vmul.f32 %v1749_v7, %v957_v55 }
 0x175   : > { %v1036_v60 = vadd.f32 %v1755_v9, %v1000_v56 }
 0x177   : > { %v1068_v35 = vmax.f32 %v1036_v60, 0.0 }
 0x179   : > { %1100 = vst [vmem:[%s1767_s17 + $0xd8] sm:$0xff] %v1068_v35 }
 0x17a PF: > { %s14_s15 = sadd.s32 1, %s1553_s15  }
 0x17b   : > { %p11_p4 = scmp.ge.s32.totalorder %s14_s15, 4  }
 0x17d   :  { %13 = sbr.rel (!%p11_p4) target bundleno = 1 (0x1), region = 66 }

// kernel: _lambda_.6
= control target key start
LH: loop header
LB: loop body
LE: loop exit
PB: predicated region body
PF: predicated region fallthrough
CT: control target
= control target key end

     0   :  { %vm276_vm0 = vcmask 261120   ;;  %s939_s1 = inlined_call_operand.vmem [shape: bf16[288,128], index: 1, kind: input, shape index: {}]   ;;  %s940_s0 = inlined_call_operand.vmem [shape: bf16[96,288], index: 0, kind: input, shape index: {}]   ;;  %s941_s2 = inlined_call_operand.vmem [shape: f32[1,128], index: 2, kind: input, shape index: {}]   ;;  %s942_s3 = inlined_call_operand.vmem [shape: f32[1,128], index: 3, kind: input, shape index: {}]   ;;  %s943_s4 = inlined_call_operand.vmem [shape: f32[96,128], index: 4, kind: output, shape index: {}]  }
   0x1   :  { %v647_v0 = vld [vmem:[%s939_s1 + $0x38] sm:$0xff]  ;;  %v657_v2 = vld [vmem:[%s939_s1 + $0x88] sm:$0xff]  ;;  %v646_v3 = vld [vmem:[%s939_s1 + $0x30] sm:$0xff] }
   0x2   :  { %v655_v1 = vld [vmem:[%s939_s1 + $0x78] sm:$0xff]  ;;  %295 = vmatpush.bf16.msra.mxu0 %v647_v0  ;;  %658 = vmatpush.bf16.msra.mxu3 %v647_v0  ;;  %v654_v4 = vld [vmem:[%s939_s1 + $0x70] sm:$0xff]  ;;  %v656_v5 = vld [vmem:[%s939_s1 + $0x80] sm:$0xff] }
   0x3   :  { %666 = vmatpush.bf16.msra.mxu1 %v655_v1  ;;  %379 = vmatpush.bf16.msra.mxu2 %v657_v2  ;;  %v482_v6 = vld [vmem:[%s940_s0 + $0x8] sm:$0xf]  ;;  %v624_v7 = vld [vmem:[%s940_s0 + $0x10] sm:$0xf0]  ;;  %v644_v11 = vld [vmem:[%s939_s1 + $0x20] sm:$0xff] }
   0x4   :  { %v645_v8 = vld [vmem:[%s939_s1 + $0x28] sm:$0xff]  ;;  %v483_v10 = vor.u32 %v624_v7, %v482_v6  ;;  %v652_v12 = vld [vmem:[%s939_s1 + $0x60] sm:$0xff]  ;;  %v643_v13 = vld [vmem:[%s939_s1 + $0x18] sm:$0xff] }
   0x5   :  { %v653_v9 = vld [vmem:[%s939_s1 + $0x68] sm:$0xff]  ;;  %v651_v14 = vld [vmem:[%s939_s1 + $0x58] sm:$0xff]  ;;  %v642_v15 = vld [vmem:[%s939_s1 + $0x10] sm:$0xff] }
   0x6   :  { %296 = vmatpush.bf16.msra.mxu0 %v646_v3  ;;  %659 = vmatpush.bf16.msra.mxu3 %v646_v3  ;;  %v650_v16 = vld [vmem:[%s939_s1 + $0x50] sm:$0xff]  ;;  %v494_v17 = vld [vmem:[%s940_s0 + $0x20] sm:$0xf]  ;;  %v627_v18 = vld [vmem:[%s940_s0 + $0x28] sm:$0xf0] }
   0x7   :  { %667 = vmatpush.bf16.msra.mxu1 %v654_v4  ;;  %380 = vmatpush.bf16.msra.mxu2 %v656_v5  ;;  %v641_v19 = vld [vmem:[%s939_s1 + $0x8] sm:$0xff]  ;;  %v495_v21 = vor.u32 %v627_v18, %v494_v17  ;;  %v640_v22 = vld [vmem:[%s939_s1] sm:$0xff]  ;;  %v486_v23 = vld [vmem:[%s940_s0 + $0x18] sm:$0xf] }
   0x8   :  { %v649_v20 = vld [vmem:[%s939_s1 + $0x48] sm:$0xff]  ;;  %v626_v24 = vld [vmem:[%s940_s0 + $0x20] sm:$0xf0]  ;;  %v474_v25 = vld [vmem:[%s940_s0] sm:$0xf] }
   0x9   :  { %v623_v26 = vld [vmem:[%s940_s0 + $0x8] sm:$0xf0]  ;;  %v648_v27 = vld [vmem:[%s939_s1 + $0x40] sm:$0xff]  ;;  %v625_v28 = vld [vmem:[%s940_s0 + $0x1c] sm:$0xf]  ;;  %v487_v30 = vor.u32 %v626_v24, %v486_v23 }
   0xa   :  { %297 = vmatpush.bf16.msra.mxu0 %v645_v8  ;;  %660 = vmatpush.bf16.msra.mxu3 %v645_v8  ;;  %v488_v29 = vld [vmem:[%s940_s0 + $0x24] sm:$0xf0]  ;;  %v475_v31 = vor.u32 %v623_v26, %v474_v25  ;;  %v506_v33 = vld [vmem:[%s940_s0 + $0x38] sm:$0xf]  ;;  %v630_v34 = vld [vmem:[%s940_s0 + $0x40] sm:$0xf0] }
   0xb   :  { %668 = vmatpush.bf16.msra.mxu1 %v653_v9  ;;  %616 = vmatmul.msk.bf16.vlgmr.msra.gmra.mxu2 %vm276_vm0, %v483_v10  ;;  %v491_v32 = vor.u32 %v625_v28, %v488_v29  ;;  %v507_v35 = vor.u32 %v630_v34, %v506_v33  ;;  %v498_v36 = vld [vmem:[%s940_s0 + $0x30] sm:$0xf]  ;;  %v629_v37 = vld [vmem:[%s940_s0 + $0x38] sm:$0xf0]  ;;  %v628_v38 = vld [vmem:[%s940_s0 + $0x34] sm:$0xf] }
   0xc   :  { %v500_v39 = vld [vmem:[%s940_s0 + $0x3c] sm:$0xf0]  ;;  %v499_v40 = vor.u32 %v629_v37, %v498_v36  ;;  %v518_v42 = vld [vmem:[%s940_s0 + $0x50] sm:$0xf]  ;;  %v633_v43 = vld [vmem:[%s940_s0 + $0x58] sm:$0xf0] }
   0xd   :  { %v503_v41 = vor.u32 %v628_v38, %v500_v39  ;;  %v519_v44 = vor.u32 %v633_v43, %v518_v42  ;;  %v622_v45 = vld [vmem:[%s940_s0 + $0x4] sm:$0xf]  ;;  %v476_v46 = vld [vmem:[%s940_s0 + $0xc] sm:$0xf0]  ;;  %v510_v48 = vld [vmem:[%s940_s0 + $0x48] sm:$0xf] }
   0xe   :  { %298 = vmatpush.bf16.msra.mxu0 %v644_v11  ;;  %661 = vmatpush.bf16.msra.mxu3 %v644_v11  ;;  %v479_v47 = vor.u32 %v622_v45, %v476_v46  ;;  %v632_v49 = vld [vmem:[%s940_s0 + $0x50] sm:$0xf0]  ;;  %v631_v50 = vld [vmem:[%s940_s0 + $0x4c] sm:$0xf]  ;;  %v512_v51 = vld [vmem:[%s940_s0 + $0x54] sm:$0xf0] }
   0xf   :  { %669 = vmatpush.bf16.msra.mxu1 %v652_v12  ;;  %v511_v52 = vor.u32 %v632_v49, %v510_v48  ;;  %v515_v53 = vor.u32 %v631_v50, %v512_v51  ;;  %v530_v54 = vld [vmem:[%s940_s0 + $0x68] sm:$0xf]  ;;  %v636_v55 = vld [vmem:[%s940_s0 + $0x70] sm:$0xf0]  ;;  %v522_v57 = vld [vmem:[%s940_s0 + $0x60] sm:$0xf] }
  0x10   :  { %v531_v56 = vor.u32 %v636_v55, %v530_v54  ;;  %v635_v58 = vld [vmem:[%s940_s0 + $0x68] sm:$0xf0]  ;;  %v634_v59 = vld [vmem:[%s940_s0 + $0x64] sm:$0xf]  ;;  %v524_v60 = vld [vmem:[%s940_s0 + $0x6c] sm:$0xf0] }
  0x11   :  { %v523_v61 = vor.u32 %v635_v58, %v522_v57  ;;  %v527_v62 = vor.u32 %v634_v59, %v524_v60  ;;  %v542_v63 = vld [vmem:[%s940_s0 + $0x80] sm:$0xf]  ;;  %v639_v0 = vld [vmem:[%s940_s0 + $0x88] sm:$0xf0]  ;;  %v534_v2 = vld [vmem:[%s940_s0 + $0x78] sm:$0xf] }
  0x12   :  { %299 = vmatpush.bf16.msra.mxu0 %v643_v13  ;;  %662 = vmatpush.bf16.msra.mxu3 %v643_v13  ;;  %v638_v3 = vld [vmem:[%s940_s0 + $0x80] sm:$0xf0]  ;;  %v536_v5 = vld [vmem:[%s940_s0 + $0x84] sm:$0xf0]  ;;  %v877_v17 = vld [vmem:[%s942_s3] ss:$0 sm:$0xff] }
  0x13   :  { %670 = vmatpush.bf16.msra.mxu1 %v651_v14  ;;  %v535_v6 = vor.u32 %v638_v3, %v534_v2 }
  0x16   :  { %300 = vmatpush.bf16.msra.mxu0 %v642_v15  ;;  %663 = vmatpush.bf16.msra.mxu3 %v642_v15 }
  0x17   :  { %671 = vmatpush.bf16.msra.mxu1 %v650_v16 }
  0x1a   :  { %301 = vmatpush.bf16.msra.mxu0 %v641_v19  ;;  %664 = vmatpush.bf16.msra.mxu3 %v641_v19 }
  0x1b   :  { %672 = vmatpush.bf16.msra.mxu1 %v649_v20  ;;  %617 = vmatmul.msk.bf16.gmra.mxu2 %vm276_vm0, %v495_v21 }
  0x1e   :  { %302 = vmatpush.bf16.msra.mxu0 %v640_v22  ;;  %665 = vmatpush.bf16.msra.mxu3 %v640_v22 }
  0x1f   :  { %673 = vmatpush.bf16.msra.mxu1 %v648_v27 }
  0x21   :  { %308 = vmatmul.bf16.vlgmr.msra.gmra.mxu3 %v487_v30  ;;  %303 = vmatmul.bf16.vlgmr.msra.gmra.mxu0 %v475_v31 }
  0x22   :  { %334 = vmatpush.bf16.msrb.mxu0 %v655_v1  ;;  %347 = vmatmul.bf16.vlgmr.msra.gmra.mxu1 %v491_v32  ;;  %v543_v1 = vor.u32 %v639_v0, %v542_v63 }
  0x26   :  { %335 = vmatpush.bf16.msrb.mxu0 %v654_v4  ;;  %v637_v4 = vld [vmem:[%s940_s0 + $0x7c] sm:$0xf] }
  0x27   :  { %v539_v7 = vor.u32 %v637_v4, %v536_v5 }
  0x2a   :  { %336 = vmatpush.bf16.msrb.mxu0 %v653_v9 }
  0x2b   :  { %618 = vmatmul.msk.bf16.gmra.mxu2 %vm276_vm0, %v507_v35 }
  0x2e   :  { %337 = vmatpush.bf16.msrb.mxu0 %v652_v12 }
  0x31   :  { %313 = vmatmul.bf16.gmra.mxu3 %v499_v40 }
  0x32   :  { %338 = vmatpush.bf16.msrb.mxu0 %v651_v14  ;;  %352 = vmatmul.bf16.gmra.mxu1 %v503_v41  ;;  %v872_v14 = vld [vmem:[%s941_s2] ss:$0 sm:$0xff] }
  0x36   :  { %339 = vmatpush.bf16.msrb.mxu0 %v650_v16 }
  0x3a   :  { %340 = vmatpush.bf16.msrb.mxu0 %v649_v20 }
  0x3b   :  { %619 = vmatmul.msk.bf16.gmra.mxu2 %vm276_vm0, %v519_v44 }
  0x3e   :  { %341 = vmatpush.bf16.msrb.mxu0 %v648_v27 }
  0x41   :  { %342 = vmatmul.bf16.vlgmr.msrb.gmra.mxu0 %v479_v47  ;;  %318 = vmatmul.bf16.gmra.mxu3 %v511_v52 }
  0x42   :  { %357 = vmatmul.bf16.gmra.mxu1 %v515_v53 }
  0x4b   :  { %620 = vmatmul.msk.bf16.gmra.mxu2 %vm276_vm0, %v531_v56 }
  0x51   :  { %323 = vmatmul.bf16.gmra.mxu3 %v523_v61 }
  0x52   :  { %362 = vmatmul.bf16.gmra.mxu1 %v527_v62 }
  0x5b   :  { %621 = vmatmul.msk.bf16.gmra.mxu2 %vm276_vm0, %v543_v1 }
  0x61   :  { %328 = vmatmul.bf16.gmra.mxu3 %v535_v6 }
  0x62   :  { %367 = vmatmul.bf16.gmra.mxu1 %v539_v7 }
  0x8e   :  { %v382_v8 = vpop.f32.mrf.mxu2 }
  0x96   :  { %v384_v9 = vpop.f32.mrf.mxu2 }
  0x9e   :  { %v387_v10 = vpop.f32.mrf.mxu2  ;;  %v304_v19 = vpop.f32.mrf.mxu0 }
  0x9f   :  { %v348_v11 = vpop.f32.mrf.mxu1 }
  0xa4   :  { %v309_v12 = vpop.f32.mrf.mxu3 }
  0xa5   :  { %v349_v13 = vadd.f32 %v348_v11, %v309_v12 }
  0xa6   :  { %v389_v15 = vpop.f32.mrf.mxu2  ;;  %v306_v29 = vpop.f32.mrf.mxu0 }
  0xa7   :  { %v388_v16 = vadd.f32 %v387_v10, %v349_v13  ;;  %v350_v18 = vpop.f32.mrf.mxu1 }
  0xa9   :  { %v418_v20 = vmul.f32 %v872_v14, %v388_v16 }
  0xab   :  { %v434_v21 = vadd.f32 %v877_v17, %v418_v20 }
  0xac   :  { %v311_v22 = vpop.f32.mrf.mxu3 }
  0xad   :  { %v446_v23 = vmax.f32 %v434_v21, 0.0  ;;  %v351_v24 = vadd.f32 %v350_v18, %v311_v22 }
  0xae   :  { %v392_v25 = vpop.f32.mrf.mxu2 }
  0xaf   :  { %458 = vst [vmem:[%s943_s4 + $0x10] sm:$0xff] %v446_v23  ;;  %v390_v26 = vadd.f32 %v389_v15, %v351_v24  ;;  %v353_v27 = vpop.f32.mrf.mxu1 }
  0xb1   :  { %v419_v28 = vmul.f32 %v872_v14, %v390_v26 }
  0xb3   :  { %v435_v30 = vadd.f32 %v877_v17, %v419_v28 }
  0xb4   :  { %v314_v31 = vpop.f32.mrf.mxu3 }
  0xb5   :  { %v447_v32 = vmax.f32 %v435_v30, 0.0  ;;  %v354_v33 = vadd.f32 %v353_v27, %v314_v31 }
  0xb6   :  { %v394_v34 = vpop.f32.mrf.mxu2 }
  0xb7   :  { %459 = vst [vmem:[%s943_s4 + $0x18] sm:$0xff] %v447_v32  ;;  %v393_v35 = vadd.f32 %v392_v25, %v354_v33  ;;  %v355_v36 = vpop.f32.mrf.mxu1 }
  0xb9   :  { %v420_v37 = vmul.f32 %v872_v14, %v393_v35 }
  0xbb   :  { %v436_v38 = vadd.f32 %v877_v17, %v420_v37 }
  0xbc   :  { %v316_v41 = vpop.f32.mrf.mxu3 }
  0xbd   :  { %v448_v42 = vmax.f32 %v436_v38, 0.0  ;;  %v356_v43 = vadd.f32 %v355_v36, %v316_v41 }
  0xbe   :  { %v343_v39 = vpop.f32.mrf.mxu0  ;;  %v397_v45 = vpop.f32.mrf.mxu2 }
  0xbf   :  { %v344_v40 = vadd.f32 %v343_v39, %v304_v19  ;;  %460 = vst [vmem:[%s943_s4 + $0x20] sm:$0xff] %v448_v42  ;;  %v395_v46 = vadd.f32 %v394_v34, %v356_v43  ;;  %v358_v47 = vpop.f32.mrf.mxu1 }
  0xc1   :  { %v383_v44 = vadd.f32 %v382_v8, %v344_v40  ;;  %v421_v49 = vmul.f32 %v872_v14, %v395_v46 }
  0xc3   :  { %v416_v48 = vmul.f32 %v872_v14, %v383_v44  ;;  %v437_v51 = vadd.f32 %v877_v17, %v421_v49 }
  0xc4   :  { %v319_v55 = vpop.f32.mrf.mxu3 }
  0xc5   :  { %v432_v50 = vadd.f32 %v877_v17, %v416_v48  ;;  %v449_v56 = vmax.f32 %v437_v51, 0.0  ;;  %v359_v57 = vadd.f32 %v358_v47, %v319_v55 }
  0xc6   :  { %v345_v52 = vpop.f32.mrf.mxu0  ;;  %v399_v59 = vpop.f32.mrf.mxu2 }
  0xc7   :  { %v444_v53 = vmax.f32 %v432_v50, 0.0  ;;  %v346_v54 = vadd.f32 %v345_v52, %v306_v29  ;;  %461 = vst [vmem:[%s943_s4 + $0x28] sm:$0xff] %v449_v56  ;;  %v398_v60 = vadd.f32 %v397_v45, %v359_v57  ;;  %v360_v61 = vpop.f32.mrf.mxu1 }
  0xc9   :  { %456 = vst [vmem:[%s943_s4] sm:$0xff] %v444_v53  ;;  %v385_v58 = vadd.f32 %v384_v9, %v346_v54  ;;  %v422_v63 = vmul.f32 %v872_v14, %v398_v60 }
  0xcb   :  { %v417_v62 = vmul.f32 %v872_v14, %v385_v58  ;;  %v438_v1 = vadd.f32 %v877_v17, %v422_v63 }
  0xcc   :  { %v321_v3 = vpop.f32.mrf.mxu3 }
  0xcd   :  { %v433_v0 = vadd.f32 %v877_v17, %v417_v62  ;;  %v450_v4 = vmax.f32 %v438_v1, 0.0  ;;  %v361_v5 = vadd.f32 %v360_v61, %v321_v3 }
  0xce   :  { %v402_v8 = vpop.f32.mrf.mxu2 }
  0xcf   :  { %v445_v2 = vmax.f32 %v433_v0, 0.0  ;;  %462 = vst [vmem:[%s943_s4 + $0x30] sm:$0xff] %v450_v4  ;;  %v400_v6 = vadd.f32 %v399_v59, %v361_v5  ;;  %v363_v7 = vpop.f32.mrf.mxu1 }
  0xd1   :  { %457 = vst [vmem:[%s943_s4 + $0x8] sm:$0xff] %v445_v2  ;;  %v423_v9 = vmul.f32 %v872_v14, %v400_v6 }
  0xd3   :  { %v439_v10 = vadd.f32 %v877_v17, %v423_v9 }
  0xd4   :  { %v324_v11 = vpop.f32.mrf.mxu3 }
  0xd5   :  { %v451_v12 = vmax.f32 %v439_v10, 0.0  ;;  %v364_v13 = vadd.f32 %v363_v7, %v324_v11 }
  0xd6   :  { %v404_v19 = vpop.f32.mrf.mxu2 }
  0xd7   :  { %463 = vst [vmem:[%s943_s4 + $0x38] sm:$0xff] %v451_v12  ;;  %v403_v15 = vadd.f32 %v402_v8, %v364_v13  ;;  %v365_v16 = vpop.f32.mrf.mxu1 }
  0xd9   :  { %v424_v18 = vmul.f32 %v872_v14, %v403_v15 }
  0xdb   :  { %v440_v20 = vadd.f32 %v877_v17, %v424_v18 }
  0xdc   :  { %v326_v21 = vpop.f32.mrf.mxu3 }
  0xdd   :  { %v452_v22 = vmax.f32 %v440_v20, 0.0  ;;  %v366_v23 = vadd.f32 %v365_v16, %v326_v21 }
  0xde   :  { %v407_v28 = vpop.f32.mrf.mxu2 }
  0xdf   :  { %464 = vst [vmem:[%s943_s4 + $0x40] sm:$0xff] %v452_v22  ;;  %v405_v24 = vadd.f32 %v404_v19, %v366_v23  ;;  %v368_v26 = vpop.f32.mrf.mxu1 }
  0xe1   :  { %v425_v25 = vmul.f32 %v872_v14, %v405_v24 }
  0xe3   :  { %v441_v27 = vadd.f32 %v877_v17, %v425_v25 }
  0xe4   :  { %v329_v29 = vpop.f32.mrf.mxu3 }
  0xe5   :  { %v453_v30 = vmax.f32 %v441_v27, 0.0  ;;  %v369_v31 = vadd.f32 %v368_v26, %v329_v29 }
  0xe6   :  { %v409_v39 = vpop.f32.mrf.mxu2 }
  0xe7   :  { %465 = vst [vmem:[%s943_s4 + $0x48] sm:$0xff] %v453_v30  ;;  %v408_v32 = vadd.f32 %v407_v28, %v369_v31  ;;  %v370_v35 = vpop.f32.mrf.mxu1 }
  0xe9   :  { %v426_v33 = vmul.f32 %v872_v14, %v408_v32 }
  0xeb   :  { %v442_v34 = vadd.f32 %v877_v17, %v426_v33 }
  0xec   :  { %v331_v36 = vpop.f32.mrf.mxu3 }
  0xed   :  { %v454_v37 = vmax.f32 %v442_v34, 0.0  ;;  %v371_v38 = vadd.f32 %v370_v35, %v331_v36 }
  0xef   :  { %466 = vst [vmem:[%s943_s4 + $0x50] sm:$0xff] %v454_v37  ;;  %v410_v40 = vadd.f32 %v409_v39, %v371_v38 }
  0xf1   :  { %v427_v41 = vmul.f32 %v872_v14, %v410_v40 }
  0xf3   :  { %v443_v42 = vadd.f32 %v877_v17, %v427_v41 }
  0xf5   :  { %v455_v43 = vmax.f32 %v443_v42, 0.0 }
  0xf7   :  { %467 = vst [vmem:[%s943_s4 + $0x58] sm:$0xff] %v455_v43 }

// kernel: _lambda_.7
= control target key start
LH: loop header
LB: loop body
LE: loop exit
PB: predicated region body
PF: predicated region fallthrough
CT: control target
= control target key end

     0   :  { %vm181_vm0 = vcmask 261120   ;;  %s464_s1 = inlined_call_operand.vmem [shape: bf16[288,128], index: 1, kind: input, shape index: {}]   ;;  %s465_s0 = inlined_call_operand.vmem [shape: bf16[16,288], index: 0, kind: input, shape index: {}]   ;;  %s466_s2 = inlined_call_operand.vmem [shape: f32[1,128], index: 2, kind: input, shape index: {}]   ;;  %s467_s3 = inlined_call_operand.vmem [shape: f32[1,128], index: 3, kind: input, shape index: {}]   ;;  %s468_s4 = inlined_call_operand.vmem [shape: f32[16,128], index: 4, kind: output, shape index: {}]  }
   0x1   :  { %v342_v0 = vld [vmem:[%s464_s1 + $0x38] sm:$0xff]  ;;  %v341_v2 = vld [vmem:[%s464_s1 + $0x30] sm:$0xff]  ;;  %v352_v4 = vld [vmem:[%s464_s1 + $0x88] sm:$0xff] }
   0x2   :  { %v350_v1 = vld [vmem:[%s464_s1 + $0x78] sm:$0xff]  ;;  %185 = vmatpush.bf16.msra.mxu0 %v342_v0  ;;  %v349_v3 = vld [vmem:[%s464_s1 + $0x70] sm:$0xff]  ;;  %219 = vmatpush.bf16.msra.mxu2 %v352_v4  ;;  %v351_v5 = vld [vmem:[%s464_s1 + $0x80] sm:$0xff] }
   0x3   :  { %199 = vmatpush.bf16.msra.mxu1 %v350_v1  ;;  %v257_v6 = vld [vmem:[%s465_s0 + $0x8] sm:$0xf]  ;;  %v334_v7 = vld [vmem:[%s465_s0 + $0x10] sm:$0xf0]  ;;  %v339_v11 = vld [vmem:[%s464_s1 + $0x20] sm:$0xff] }
   0x4   :  { %v340_v8 = vld [vmem:[%s464_s1 + $0x28] sm:$0xff]  ;;  %v258_v10 = vor.u32 %v334_v7, %v257_v6  ;;  %v347_v12 = vld [vmem:[%s464_s1 + $0x60] sm:$0xff]  ;;  %v338_v13 = vld [vmem:[%s464_s1 + $0x18] sm:$0xff] }
   0x5   :  { %v348_v9 = vld [vmem:[%s464_s1 + $0x68] sm:$0xff]  ;;  %v346_v14 = vld [vmem:[%s464_s1 + $0x58] sm:$0xff]  ;;  %v337_v15 = vld [vmem:[%s464_s1 + $0x10] sm:$0xff] }
   0x6   :  { %186 = vmatpush.bf16.msra.mxu0 %v341_v2  ;;  %220 = vmatpush.bf16.msra.mxu2 %v351_v5  ;;  %v345_v16 = vld [vmem:[%s464_s1 + $0x50] sm:$0xff]  ;;  %v336_v17 = vld [vmem:[%s464_s1 + $0x8] sm:$0xff]  ;;  %v335_v19 = vld [vmem:[%s464_s1] sm:$0xff] }
   0x7   :  { %200 = vmatpush.bf16.msra.mxu1 %v349_v3  ;;  %v344_v18 = vld [vmem:[%s464_s1 + $0x48] sm:$0xff]  ;;  %v343_v20 = vld [vmem:[%s464_s1 + $0x40] sm:$0xff]  ;;  %v251_v24 = vld [vmem:[%s465_s0 + $0xc] sm:$0xf0] }
   0x8   :  { %v249_v21 = vld [vmem:[%s465_s0] sm:$0xf]  ;;  %v333_v22 = vld [vmem:[%s465_s0 + $0x8] sm:$0xf0]  ;;  %v332_v23 = vld [vmem:[%s465_s0 + $0x4] sm:$0xf] }
   0x9   :  { %331 = vmatmul.msk.bf16.vlgmr.msra.gmra.mxu2 %vm181_vm0, %v258_v10  ;;  %v250_v25 = vor.u32 %v333_v22, %v249_v21  ;;  %v254_v26 = vor.u32 %v332_v23, %v251_v24  ;;  %v353_v31 = vld [vmem:[%s466_s2] ss:$0 sm:$0xff] }
   0xa   :  { %187 = vmatpush.bf16.msra.mxu0 %v340_v8  ;;  %v354_v33 = vld [vmem:[%s467_s3] ss:$0 sm:$0xff] }
   0xb   :  { %201 = vmatpush.bf16.msra.mxu1 %v348_v9 }
   0xe   :  { %188 = vmatpush.bf16.msra.mxu0 %v339_v11 }
   0xf   :  { %202 = vmatpush.bf16.msra.mxu1 %v347_v12 }
  0x12   :  { %189 = vmatpush.bf16.msra.mxu0 %v338_v13 }
  0x13   :  { %203 = vmatpush.bf16.msra.mxu1 %v346_v14 }
  0x16   :  { %190 = vmatpush.bf16.msra.mxu0 %v337_v15 }
  0x17   :  { %204 = vmatpush.bf16.msra.mxu1 %v345_v16 }
  0x1a   :  { %191 = vmatpush.bf16.msra.mxu0 %v336_v17 }
  0x1b   :  { %205 = vmatpush.bf16.msra.mxu1 %v344_v18 }
  0x1e   :  { %192 = vmatpush.bf16.msra.mxu0 %v335_v19 }
  0x1f   :  { %206 = vmatpush.bf16.msra.mxu1 %v343_v20 }
  0x21   :  { %193 = vmatmul.bf16.vlgmr.msra.gmra.mxu0 %v250_v25 }
  0x22   :  { %207 = vmatmul.bf16.vlgmr.msra.gmra.mxu1 %v254_v26 }
  0x8c   :  { %v222_v27 = vpop.f32.mrf.mxu2 }
  0x94   :  { %v224_v40 = vpop.f32.mrf.mxu2 }
  0x9e   :  { %v194_v28 = vpop.f32.mrf.mxu0 }
  0x9f   :  { %v208_v29 = vpop.f32.mrf.mxu1 }
  0xa0   :  { %v209_v30 = vadd.f32 %v208_v29, %v194_v28 }
  0xa2   :  { %v223_v32 = vadd.f32 %v222_v27, %v209_v30 }
  0xa4   :  { %v231_v34 = vmul.f32 %v353_v31, %v223_v32 }
  0xa6   :  { %v237_v35 = vadd.f32 %v354_v33, %v231_v34  ;;  %v196_v36 = vpop.f32.mrf.mxu0 }
  0xa7   :  { %v210_v37 = vpop.f32.mrf.mxu1 }
  0xa8   :  { %v239_v38 = vmax.f32 %v237_v35, 0.0  ;;  %v211_v39 = vadd.f32 %v210_v37, %v196_v36 }
  0xaa   :  { %241 = vst [vmem:[%s468_s4] sm:$0xff] %v239_v38  ;;  %v225_v41 = vadd.f32 %v224_v40, %v211_v39 }
  0xac   :  { %v232_v42 = vmul.f32 %v353_v31, %v225_v41 }
  0xae   :  { %v238_v43 = vadd.f32 %v354_v33, %v232_v42 }
  0xb0   :  { %v240_v44 = vmax.f32 %v238_v43, 0.0 }
  0xb2   :  { %242 = vst [vmem:[%s468_s4 + $0x8] sm:$0xff] %v240_v44 }

</bundles_post_ra>
